<compile_context>
chip_gen: v6e
topology: v6e:2x2x1
jax: 0.10.0
libtpu: 0.0.40
codegen_flags: <defaults>
</compile_context>

<pallas_src>
import functools

import jax
import jax.numpy as jnp
import numpy as np
from jax.experimental import pallas as pl
from jax.experimental.pallas import tpu as pltpu

LN_EPS = 1e-5  # PyTorch nn.LayerNorm default


# ----------------------------------------------------------------------------
# Math helpers (pure jnp; shared by the Pallas kernel and the JAX reference).
# ----------------------------------------------------------------------------
def _matmul(x, w):
    # bf16 (weight-dtype) MXU matmul, f32 accumulation.
    return jnp.dot(x.astype(w.dtype), w, preferred_element_type=jnp.float32)


def _linear(x, w, b):
    return _matmul(x, w) + b


def _layernorm(x, gamma, beta):
    mean = jnp.mean(x, axis=-1, keepdims=True)
    var = jnp.mean(jnp.square(x - mean), axis=-1, keepdims=True)
    return (x - mean) * jax.lax.rsqrt(var + LN_EPS) * gamma + beta


# ----------------------------------------------------------------------------
# Pallas kernel: one full CrossModalCalibration layer
# (MHCrossAttLayer + vision TransformerLayer + semantic TransformerLayer)
# fused over a tile of tokens.
# ----------------------------------------------------------------------------
def _layer_kernel(vx_ref, sx_ref,
                  w_in_v, w_in_s, b_in, ex, b_ex, w_21, b_21, ln_c,
                  tw, tb, ln_t,
                  vout_ref, sout_ref, *, nheads, hh):
    H = vx_ref.shape[-1]
    vx = vx_ref[...].astype(jnp.float32)
    sx = sx_ref[...].astype(jnp.float32)

    # Stream-fused first stage: one [M,H]@[H,2H] MXU matmul per modality.
    #   vx -> (W3_v(vx) | SQ_s(vx)),   sx -> (SQ_v(sx) | W3_s(sx))
    y_v = _matmul(vx, w_in_v[...]) + b_in[0]
    y_s = _matmul(sx, w_in_s[...]) + b_in[1]
    w3_v, sq_s = y_v[:, :H], y_v[:, H:]
    sq_v, w3_s = y_s[:, :H], y_s[:, H:]

    def cross_tail(x_self, w3_out, sq_out, ex_h, bex, w2, b2, w1, b1, ln):
        # sigmoid(ex_i(relu(sq_i(other)))) * W3_i(self), concat over heads,
        # then  self + W1(relu(LN(W2(.)))).
        z = jnp.maximum(sq_out, 0.0)
        att_pre = jnp.concatenate(
            [_matmul(z[:, i * hh:(i + 1) * hh], ex_h[i]) for i in range(nheads)],
            axis=-1) + bex
        emb = jax.nn.sigmoid(att_pre) * w3_out
        h = jnp.maximum(_layernorm(_matmul(emb, w2) + b2, ln[0], ln[1]), 0.0)
        return x_self + _matmul(h, w1) + b1

    att_vx = cross_tail(vx, w3_v, sq_v, ex[0], b_ex[0],
                        w_21[0], b_21[0], w_21[1], b_21[1], ln_c[0])
    att_sx = cross_tail(sx, w3_s, sq_s, ex[1], b_ex[1],
                        w_21[2], b_21[2], w_21[3], b_21[3], ln_c[1])

    def transformer(x, w3, bw3, w2, bw2, w1, bw1, ln):
        # The softmax is over the hidden axis (sums to 1) and the second einsum
        # 'abc,abf->abf' reduces exactly that axis, so x_i == W3_i(x): the
        # bilinear/softmax path is the identity on the output and is dropped.
        x_t = _matmul(x, w3) + bw3
        h = jnp.maximum(_layernorm(_matmul(x_t, w2) + bw2, ln[0], ln[1]), 0.0)
        return x + _matmul(h, w1) + bw1

    v_out = transformer(att_vx, tw[0], tb[0], tw[1], tb[1], tw[2], tb[2], ln_t[0])
    s_out = transformer(att_sx, tw[3], tb[3], tw[4], tb[4], tw[5], tb[5], ln_t[1])

    vout_ref[...] = v_out.astype(vout_ref.dtype)
    sout_ref[...] = s_out.astype(sout_ref.dtype)


def _round_up(x, m):
    return ((x + m - 1) // m) * m


def _pack_layer(layer):
    """Repack the per-branch parameter dict into the kernel's fused layout."""
    cvw, cvex, cvb, cvln = layer["cv"]   # w:[4,H,H]=(W3,SQ,W2,W1) ex:[nh,hh,hh] b:[5,H] ln:[2,H]
    csw, csex, csb, csln = layer["cs"]
    _, _, _, tvw, tvb, tvln = layer["tv"]   # tw:[3,H,H]=(W3,W2,W1) tb:[3,H] ln:[2,H]
    _, _, _, tsw, tsb, tsln = layer["ts"]

    w_in_v = jnp.concatenate([cvw[0], csw[1]], axis=1)   # [H, 2H]  (W3_v | SQ_s)
    w_in_s = jnp.concatenate([cvw[1], csw[0]], axis=1)   # [H, 2H]  (SQ_v | W3_s)
    b_in = jnp.stack([jnp.concatenate([cvb[0], csb[1]]),
                      jnp.concatenate([cvb[1], csb[0]])])            # [2, 2H]
    ex = jnp.stack([cvex, csex])                                      # [2, nh, hh, hh]
    b_ex = jnp.stack([cvb[2], csb[2]])                                # [2, H]
    w_21 = jnp.stack([cvw[2], cvw[3], csw[2], csw[3]])                # [4, H, H]
    b_21 = jnp.stack([cvb[3], cvb[4], csb[3], csb[4]])                # [4, H]
    ln_c = jnp.stack([cvln, csln])                                    # [2, 2, H]
    tw = jnp.concatenate([tvw, tsw])                                  # [6, H, H]
    tb = jnp.concatenate([tvb, tsb])                                  # [6, H]
    ln_t = jnp.stack([tvln, tsln])                                    # [2, 2, H]
    return (w_in_v, w_in_s, b_in, ex, b_ex, w_21, b_21, ln_c, tw, tb, ln_t)


def _vmem_limit_bytes(weights, tile, hidden):
    w_bytes = sum(int(w.size) * w.dtype.itemsize for w in weights)
    tok_bytes = tile * hidden * 4  # f32 token tile
    # weights (whole-block resident, 2 pipeline buffers each) + double-buffered
    # 2 in / 2 out token tiles + headroom for compiler scratch.
    need = 2 * w_bytes + 2 * 4 * tok_bytes + (8 << 20)
    return int(min(need, 64 << 20))  # 64 MiB fits every generation (v7x per-TC cap)


def cross_modal_calibration(vx, sx, params, *, nheads=2, tile_m=256):
    """params: list (one per layer) of dicts produced by init_params."""
    B, S, H = vx.shape
    hh = H // nheads
    N = B * S

    # Large token tiles; pad the token count so any B*S works.
    tile = _round_up(min(int(tile_m), N), 8)
    n_pad = _round_up(N, tile)
    grid = n_pad // tile

    vx2 = vx.reshape(N, H)
    sx2 = sx.reshape(N, H)
    if n_pad != N:
        pad = n_pad - N
        vx2 = jnp.pad(vx2, ((0, pad), (0, 0)))
        sx2 = jnp.pad(sx2, ((0, pad), (0, 0)))

    tok_spec = pl.BlockSpec((tile, H), lambda m: (m, 0))

    def full_spec(arr):
        nd = arr.ndim
        return pl.BlockSpec(arr.shape, lambda m, _nd=nd: (0,) * _nd)

    for layer in params:
        weights = _pack_layer(layer)
        in_specs = [tok_spec, tok_spec] + [full_spec(w) for w in weights]
        vx2, sx2 = pl.pallas_call(
            functools.partial(_layer_kernel, nheads=nheads, hh=hh),
            out_shape=(jax.ShapeDtypeStruct((n_pad, H), vx.dtype),
                       jax.ShapeDtypeStruct((n_pad, H), sx.dtype)),
            grid_spec=pltpu.PrefetchScalarGridSpec(
                num_scalar_prefetch=0,
                grid=(grid,),
                in_specs=in_specs,
                out_specs=(tok_spec, tok_spec)),
            compiler_params=pltpu.CompilerParams(
                dimension_semantics=("parallel",),
                vmem_limit_bytes=_vmem_limit_bytes(weights, tile, H)),
        )(vx2, sx2, *weights)

    vx2 = vx2[:N]
    sx2 = sx2[:N]
    return vx2.reshape(B, S, H), sx2.reshape(B, S, H)


# ----------------------------------------------------------------------------
# Deterministic parameter construction (synthetic; matches module shapes).
# Matmul weights are stored in bf16 (MXU-native, halves VMEM/DMA footprint);
# biases / LayerNorm params / coef stay f32.
# ----------------------------------------------------------------------------
def init_params(key, hidden_dim, nheads=2, nlayers=1, weight_dtype=jnp.bfloat16):
    H = hidden_dim
    hh = H // nheads
    scale = 1.0 / np.sqrt(H)

    def rnd(k, shape, s):
        return jax.random.normal(k, shape, dtype=jnp.float32) * s

    layers = []
    for lk in jax.random.split(key, nlayers):
        kit = iter(jax.random.split(lk, 64))

        def nxt():
            return next(kit)

        def cross_branch_params():
            W3 = jnp.concatenate([rnd(nxt(), (H, hh), scale) for _ in range(nheads)], axis=1)
            SQ = jnp.concatenate([rnd(nxt(), (H, hh), scale) for _ in range(nheads)], axis=1)
            EX = jnp.stack([rnd(nxt(), (hh, hh), 1.0 / np.sqrt(hh)) for _ in range(nheads)])
            W2 = rnd(nxt(), (H, H), scale)
            W1 = rnd(nxt(), (H, H), scale)
            w = jnp.stack([W3, SQ, W2, W1]).astype(weight_dtype)
            ex = EX.astype(weight_dtype)
            b = jnp.stack([rnd(nxt(), (H,), scale) for _ in range(5)]).astype(jnp.float32)
            ln = jnp.stack([jnp.ones((H,)), jnp.zeros((H,))]).astype(jnp.float32)
            return (w, ex, b, ln)

        def transformer_params():
            blw = jnp.stack([rnd(nxt(), (H, H), scale)
                             for _ in range(2 * nheads)]).astype(weight_dtype)
            blb = jnp.stack([rnd(nxt(), (H,), scale)
                             for _ in range(2 * nheads)]).astype(jnp.float32)
            coef = jnp.full((nheads, H), 1.0 / np.sqrt(H), jnp.float32)
            W3 = jnp.concatenate([rnd(nxt(), (H, hh), scale) for _ in range(nheads)], axis=1)
            W2 = rnd(nxt(), (H, H), scale)
            W1 = rnd(nxt(), (H, H), scale)
            tw = jnp.stack([W3, W2, W1]).astype(weight_dtype)
            tb = jnp.stack([rnd(nxt(), (H,), scale) for _ in range(3)]).astype(jnp.float32)
            ln = jnp.stack([jnp.ones((H,)), jnp.zeros((H,))]).astype(jnp.float32)
            return (blw, blb, coef, tw, tb, ln)

        layers.append({
            "cv": cross_branch_params(),   # vision cross branch
            "cs": cross_branch_params(),   # semantic cross branch
            "tv": transformer_params(),    # vision_intra_trans
            "ts": transformer_params(),    # semantic_intra_trans
        })
    return layers


# ----------------------------------------------------------------------------
# Plain-JAX reference — FULL module math (including the bilinear/softmax path
# the kernel drops), same packed params and matmul numerics.
# ----------------------------------------------------------------------------
def _cross_branch_ref(x_self, x_other, w, ex, b, ln, nheads, hh):
    z = jnp.maximum(_linear(x_other, w[1], b[1]), 0.0)              # relu(sq(x_other))
    att_pre = jnp.concatenate(
        [_matmul(z[:, i * hh:(i + 1) * hh], ex[i]) for i in range(nheads)],
        axis=-1) + b[2]                                             # per-head ex
    att = jax.nn.sigmoid(att_pre)
    emb = att * _linear(x_self, w[0], b[0])                         # att * W3(x_self)
    h = jnp.maximum(_layernorm(_linear(emb, w[2], b[3]), ln[0], ln[1]), 0.0)
    return x_self + _linear(h, w[3], b[4])


def _transformer_ref(x, blw, blb, coef, tw, tb, ln, nheads, hh):
    emb_all = _linear(x, tw[0], tb[0])
    pieces = []
    for i in range(nheads):
        b1 = _linear(x, blw[i], blb[i])
        b2 = _linear(x, blw[nheads + i], blb[nheads + i])
        # einsum('abc,abd->abc', b1*coef, b2) == (b1*coef) * sum_d(b2)
        t = (b1 * coef[i]) * jnp.sum(b2, axis=-1, keepdims=True)
        p = jax.nn.softmax(t, axis=-1)
        # einsum('abc,abf->abf', softmax, W3(x)) == W3(x) * sum_c(softmax)
        s = jnp.sum(p, axis=-1, keepdims=True)
        pieces.append(s * emb_all[:, i * hh:(i + 1) * hh])
    x_trans = jnp.concatenate(pieces, axis=-1)
    h = jnp.maximum(_layernorm(_linear(x_trans, tw[1], tb[1]), ln[0], ln[1]), 0.0)
    return x + _linear(h, tw[2], tb[2])


def reference(vx, sx, params, nheads=2):
    B, S, H = vx.shape
    hh = H // nheads
    v = vx.reshape(-1, H).astype(jnp.float32)
    s = sx.reshape(-1, H).astype(jnp.float32)
    for layer in params:
        cvw, cvex, cvb, cvln = layer["cv"]
        csw, csex, csb, csln = layer["cs"]
        tvblw, tvblb, tvcoef, tvw, tvb, tvln = layer["tv"]
        tsblw, tsblb, tscoef, tsw, tsb, tsln = layer["ts"]
        av = _cross_branch_ref(v, s, cvw, cvex, cvb, cvln, nheads, hh)
        as_ = _cross_branch_ref(s, v, csw, csex, csb, csln, nheads, hh)
        v = _transformer_ref(av, tvblw, tvblb, tvcoef, tvw, tvb, tvln, nheads, hh)
        s = _transformer_ref(as_, tsblw, tsblb, tscoef, tsw, tsb, tsln, nheads, hh)
    return v.reshape(B, S, H), s.reshape(B, S, H)


if __name__ == "__main__":
    B, S, H = 2, 8, 32        # small shapes consistent with [B, 25, 768] semantics
    NHEADS, NLAYERS = 2, 1

    key = jax.random.PRNGKey(0)
    k_vx, k_sx, k_p = jax.random.split(key, 3)
    vx = jax.random.normal(k_vx, (B, S, H), dtype=jnp.float32)
    sx = jax.random.normal(k_sx, (B, S, H), dtype=jnp.float32)
    params = init_params(k_p, H, nheads=NHEADS, nlayers=NLAYERS)

    v_out, s_out = cross_modal_calibration(vx, sx, params, nheads=NHEADS, tile_m=256)
    jax.block_until_ready((v_out, s_out))

    v_ref, s_ref = reference(vx, sx, params, nheads=NHEADS)
    np.testing.assert_allclose(np.asarray(v_out), np.asarray(v_ref), rtol=2e-3, atol=2e-3)
    np.testing.assert_allclose(np.asarray(s_out), np.asarray(s_ref), rtol=2e-3, atol=2e-3)

    print("KERNEL_OK")
</pallas_src>

<mosaic_0001>
module attributes {stable_mosaic.version = 11 : i64} {
  func.func @_layer_kernel(%arg0: i32, %arg1: memref<16x32xf32, #tpu.memory_space<vmem>>, %arg2: memref<16x32xf32, #tpu.memory_space<vmem>>, %arg3: memref<32x64xbf16, #tpu.memory_space<vmem>>, %arg4: memref<32x64xbf16, #tpu.memory_space<vmem>>, %arg5: memref<2x64xf32, #tpu.memory_space<vmem>>, %arg6: memref<2x2x16x16xbf16, #tpu.memory_space<vmem>>, %arg7: memref<2x32xf32, #tpu.memory_space<vmem>>, %arg8: memref<4x32x32xbf16, #tpu.memory_space<vmem>>, %arg9: memref<4x32xf32, #tpu.memory_space<vmem>>, %arg10: memref<2x2x32xf32, #tpu.memory_space<vmem>>, %arg11: memref<6x32x32xbf16, #tpu.memory_space<vmem>>, %arg12: memref<6x32xf32, #tpu.memory_space<vmem>>, %arg13: memref<2x2x32xf32, #tpu.memory_space<vmem>>, %arg14: memref<16x32xf32, #tpu.memory_space<vmem>>, %arg15: memref<16x32xf32, #tpu.memory_space<vmem>>) attributes {dimension_semantics = [#tpu.dimension_semantics<parallel>], iteration_bounds = array<i64: 1>, scalar_prefetch = 0 : i64, scratch_operands = 0 : i64, tpu.core_type = #tpu.core_type<tc>, window_params = [{transform_indices = @transform_0, window_bounds = array<i64: 16, 32>}, {transform_indices = @transform_1, window_bounds = array<i64: 16, 32>}, {pipeline_mode = #tpu.pipeline_mode<synchronous>, transform_indices = @transform_2, window_bounds = array<i64: 32, 64>}, {pipeline_mode = #tpu.pipeline_mode<synchronous>, transform_indices = @transform_3, window_bounds = array<i64: 32, 64>}, {pipeline_mode = #tpu.pipeline_mode<synchronous>, transform_indices = @transform_4, window_bounds = array<i64: 2, 64>}, {pipeline_mode = #tpu.pipeline_mode<synchronous>, transform_indices = @transform_5, window_bounds = array<i64: 2, 2, 16, 16>}, {pipeline_mode = #tpu.pipeline_mode<synchronous>, transform_indices = @transform_6, window_bounds = array<i64: 2, 32>}, {pipeline_mode = #tpu.pipeline_mode<synchronous>, transform_indices = @transform_7, window_bounds = array<i64: 4, 32, 32>}, {pipeline_mode = #tpu.pipeline_mode<synchronous>, transform_indices = @transform_8, window_bounds = array<i64: 4, 32>}, {pipeline_mode = #tpu.pipeline_mode<synchronous>, transform_indices = @transform_9, window_bounds = array<i64: 2, 2, 32>}, {pipeline_mode = #tpu.pipeline_mode<synchronous>, transform_indices = @transform_10, window_bounds = array<i64: 6, 32, 32>}, {pipeline_mode = #tpu.pipeline_mode<synchronous>, transform_indices = @transform_11, window_bounds = array<i64: 6, 32>}, {pipeline_mode = #tpu.pipeline_mode<synchronous>, transform_indices = @transform_12, window_bounds = array<i64: 2, 2, 32>}, {transform_indices = @transform_13, window_bounds = array<i64: 16, 32>}, {transform_indices = @transform_14, window_bounds = array<i64: 16, 32>}]} {
    %c0 = arith.constant 0 : index
    %c0_0 = arith.constant 0 : index
    %0 = vector.load %arg1[%c0, %c0_0] : memref<16x32xf32, #tpu.memory_space<vmem>>, vector<16x32xf32>
    %c0_1 = arith.constant 0 : index
    %c0_2 = arith.constant 0 : index
    %1 = vector.load %arg2[%c0_1, %c0_2] : memref<16x32xf32, #tpu.memory_space<vmem>>, vector<16x32xf32>
    %c0_3 = arith.constant 0 : index
    %c0_4 = arith.constant 0 : index
    %2 = vector.load %arg3[%c0_3, %c0_4] : memref<32x64xbf16, #tpu.memory_space<vmem>>, vector<32x64xbf16>
    %3 = arith.truncf %0 : vector<16x32xf32> to vector<16x32xbf16>
    %cst = arith.constant dense<0.000000e+00> : vector<16x64xf32>
    %4 = tpu.matmul %3, %2, %cst {dimension_numbers = #tpu.dot_dimension_numbers<[1], [0], [0], [1], [0, 0, 1, 1], [], []>} : vector<16x32xbf16>, vector<32x64xbf16>, vector<16x64xf32> -> vector<16x64xf32>
    %c0_5 = arith.constant 0 : index
    %c0_6 = arith.constant 0 : index
    %5 = vector.load %arg5[%c0_5, %c0_6] : memref<2x64xf32, #tpu.memory_space<vmem>>, vector<1x64xf32>
    %6 = vector.shape_cast %5 : vector<1x64xf32> to vector<64xf32>
    %7 = vector.shape_cast %6 : vector<64xf32> to vector<1x64xf32>
    %8 = vector.broadcast %7 : vector<1x64xf32> to vector<16x64xf32>
    %9 = arith.addf %4, %8 : vector<16x64xf32>
    %c0_7 = arith.constant 0 : index
    %c0_8 = arith.constant 0 : index
    %10 = vector.load %arg4[%c0_7, %c0_8] : memref<32x64xbf16, #tpu.memory_space<vmem>>, vector<32x64xbf16>
    %11 = arith.truncf %1 : vector<16x32xf32> to vector<16x32xbf16>
    %cst_9 = arith.constant dense<0.000000e+00> : vector<16x64xf32>
    %12 = tpu.matmul %11, %10, %cst_9 {dimension_numbers = #tpu.dot_dimension_numbers<[1], [0], [0], [1], [0, 0, 1, 1], [], []>} : vector<16x32xbf16>, vector<32x64xbf16>, vector<16x64xf32> -> vector<16x64xf32>
    %c1 = arith.constant 1 : index
    %c0_10 = arith.constant 0 : index
    %13 = vector.load %arg5[%c1, %c0_10] : memref<2x64xf32, #tpu.memory_space<vmem>>, vector<1x64xf32>
    %14 = vector.shape_cast %13 : vector<1x64xf32> to vector<64xf32>
    %15 = vector.shape_cast %14 : vector<64xf32> to vector<1x64xf32>
    %16 = vector.broadcast %15 : vector<1x64xf32> to vector<16x64xf32>
    %17 = arith.addf %12, %16 : vector<16x64xf32>
    %18 = vector.extract_strided_slice %9 {offsets = [0, 0], sizes = [16, 32], strides = [1, 1]} : vector<16x64xf32> to vector<16x32xf32>
    %19 = vector.extract_strided_slice %9 {offsets = [0, 32], sizes = [16, 32], strides = [1, 1]} : vector<16x64xf32> to vector<16x32xf32>
    %20 = vector.extract_strided_slice %17 {offsets = [0, 0], sizes = [16, 32], strides = [1, 1]} : vector<16x64xf32> to vector<16x32xf32>
    %21 = vector.extract_strided_slice %17 {offsets = [0, 32], sizes = [16, 32], strides = [1, 1]} : vector<16x64xf32> to vector<16x32xf32>
    %c0_11 = arith.constant 0 : index
    %c0_12 = arith.constant 0 : index
    %c0_13 = arith.constant 0 : index
    %c0_14 = arith.constant 0 : index
    %22 = vector.load %arg6[%c0_11, %c0_12, %c0_13, %c0_14] : memref<2x2x16x16xbf16, #tpu.memory_space<vmem>>, vector<1x2x16x16xbf16>
    %23 = vector.shape_cast %22 : vector<1x2x16x16xbf16> to vector<2x16x16xbf16>
    %c0_15 = arith.constant 0 : index
    %c0_16 = arith.constant 0 : index
    %24 = vector.load %arg7[%c0_15, %c0_16] : memref<2x32xf32, #tpu.memory_space<vmem>>, vector<1x32xf32>
    %25 = vector.shape_cast %24 : vector<1x32xf32> to vector<32xf32>
    %c0_17 = arith.constant 0 : index
    %c0_18 = arith.constant 0 : index
    %c0_19 = arith.constant 0 : index
    %26 = vector.load %arg8[%c0_17, %c0_18, %c0_19] : memref<4x32x32xbf16, #tpu.memory_space<vmem>>, vector<1x32x32xbf16>
    %27 = vector.shape_cast %26 : vector<1x32x32xbf16> to vector<32x32xbf16>
    %c0_20 = arith.constant 0 : index
    %c0_21 = arith.constant 0 : index
    %28 = vector.load %arg9[%c0_20, %c0_21] : memref<4x32xf32, #tpu.memory_space<vmem>>, vector<1x32xf32>
    %29 = vector.shape_cast %28 : vector<1x32xf32> to vector<32xf32>
    %c1_22 = arith.constant 1 : index
    %c0_23 = arith.constant 0 : index
    %c0_24 = arith.constant 0 : index
    %30 = vector.load %arg8[%c1_22, %c0_23, %c0_24] : memref<4x32x32xbf16, #tpu.memory_space<vmem>>, vector<1x32x32xbf16>
    %31 = vector.shape_cast %30 : vector<1x32x32xbf16> to vector<32x32xbf16>
    %c1_25 = arith.constant 1 : index
    %c0_26 = arith.constant 0 : index
    %32 = vector.load %arg9[%c1_25, %c0_26] : memref<4x32xf32, #tpu.memory_space<vmem>>, vector<1x32xf32>
    %33 = vector.shape_cast %32 : vector<1x32xf32> to vector<32xf32>
    %c0_27 = arith.constant 0 : index
    %c0_28 = arith.constant 0 : index
    %c0_29 = arith.constant 0 : index
    %34 = vector.load %arg10[%c0_27, %c0_28, %c0_29] : memref<2x2x32xf32, #tpu.memory_space<vmem>>, vector<1x2x32xf32>
    %35 = vector.shape_cast %34 : vector<1x2x32xf32> to vector<2x32xf32>
    %cst_30 = arith.constant 0.000000e+00 : f32
    %36 = vector.broadcast %cst_30 : f32 to vector<16x32xf32>
    %37 = arith.maximumf %20, %36 : vector<16x32xf32>
    %38 = vector.extract_strided_slice %37 {offsets = [0, 0], sizes = [16, 16], strides = [1, 1]} : vector<16x32xf32> to vector<16x16xf32>
    %39 = vector.extract_strided_slice %23 {offsets = [0, 0, 0], sizes = [1, 16, 16], strides = [1, 1, 1]} : vector<2x16x16xbf16> to vector<1x16x16xbf16>
    %40 = vector.shape_cast %39 : vector<1x16x16xbf16> to vector<16x16xbf16>
    %41 = arith.truncf %38 : vector<16x16xf32> to vector<16x16xbf16>
    %cst_31 = arith.constant dense<0.000000e+00> : vector<16x16xf32>
    %42 = tpu.matmul %41, %40, %cst_31 {dimension_numbers = #tpu.dot_dimension_numbers<[1], [0], [0], [1], [0, 0, 1, 1], [], []>} : vector<16x16xbf16>, vector<16x16xbf16>, vector<16x16xf32> -> vector<16x16xf32>
    %43 = vector.extract_strided_slice %37 {offsets = [0, 16], sizes = [16, 16], strides = [1, 1]} : vector<16x32xf32> to vector<16x16xf32>
    %44 = vector.extract_strided_slice %23 {offsets = [1, 0, 0], sizes = [1, 16, 16], strides = [1, 1, 1]} : vector<2x16x16xbf16> to vector<1x16x16xbf16>
    %45 = vector.shape_cast %44 : vector<1x16x16xbf16> to vector<16x16xbf16>
    %46 = arith.truncf %43 : vector<16x16xf32> to vector<16x16xbf16>
    %cst_32 = arith.constant dense<0.000000e+00> : vector<16x16xf32>
    %47 = tpu.matmul %46, %45, %cst_32 {dimension_numbers = #tpu.dot_dimension_numbers<[1], [0], [0], [1], [0, 0, 1, 1], [], []>} : vector<16x16xbf16>, vector<16x16xbf16>, vector<16x16xf32> -> vector<16x16xf32>
    %48 = tpu.concatenate %42, %47 in 1 : vector<16x16xf32>, vector<16x16xf32> -> vector<16x32xf32>
    %49 = vector.shape_cast %25 : vector<32xf32> to vector<1x32xf32>
    %50 = vector.broadcast %49 : vector<1x32xf32> to vector<16x32xf32>
    %51 = arith.addf %48, %50 : vector<16x32xf32>
    %52 = arith.negf %51 : vector<16x32xf32>
    %53 = math.exp %52 : vector<16x32xf32>
    %cst_33 = arith.constant 1.000000e+00 : f32
    %54 = vector.broadcast %cst_33 : f32 to vector<16x32xf32>
    %55 = arith.addf %54, %53 : vector<16x32xf32>
    %56 = arith.divf %54, %55 : vector<16x32xf32>
    %57 = arith.mulf %56, %18 : vector<16x32xf32>
    %58 = arith.truncf %57 : vector<16x32xf32> to vector<16x32xbf16>
    %cst_34 = arith.constant dense<0.000000e+00> : vector<16x32xf32>
    %59 = tpu.matmul %58, %27, %cst_34 {dimension_numbers = #tpu.dot_dimension_numbers<[1], [0], [0], [1], [0, 0, 1, 1], [], []>} : vector<16x32xbf16>, vector<32x32xbf16>, vector<16x32xf32> -> vector<16x32xf32>
    %60 = vector.shape_cast %29 : vector<32xf32> to vector<1x32xf32>
    %61 = vector.broadcast %60 : vector<1x32xf32> to vector<16x32xf32>
    %62 = arith.addf %59, %61 : vector<16x32xf32>
    %63 = vector.extract_strided_slice %35 {offsets = [0, 0], sizes = [1, 32], strides = [1, 1]} : vector<2x32xf32> to vector<1x32xf32>
    %64 = vector.shape_cast %63 : vector<1x32xf32> to vector<32xf32>
    %65 = vector.extract_strided_slice %35 {offsets = [1, 0], sizes = [1, 32], strides = [1, 1]} : vector<2x32xf32> to vector<1x32xf32>
    %66 = vector.shape_cast %65 : vector<1x32xf32> to vector<32xf32>
    %cst_35 = arith.constant dense<0.000000e+00> : vector<16xf32>
    %67 = vector.multi_reduction <add>, %62, %cst_35 [1] : vector<16x32xf32> to vector<16xf32>
    %68 = vector.shape_cast %67 : vector<16xf32> to vector<16x1xf32>
    %cst_36 = arith.constant 3.200000e+01 : f32
    %69 = vector.broadcast %cst_36 : f32 to vector<16x1xf32>
    %70 = arith.divf %68, %69 : vector<16x1xf32>
    %71 = vector.broadcast %70 : vector<16x1xf32> to vector<16x32xf32>
    %72 = arith.subf %62, %71 : vector<16x32xf32>
    %73 = arith.mulf %72, %72 : vector<16x32xf32>
    %cst_37 = arith.constant dense<0.000000e+00> : vector<16xf32>
    %74 = vector.multi_reduction <add>, %73, %cst_37 [1] : vector<16x32xf32> to vector<16xf32>
    %75 = vector.shape_cast %74 : vector<16xf32> to vector<16x1xf32>
    %cst_38 = arith.constant 3.200000e+01 : f32
    %76 = vector.broadcast %cst_38 : f32 to vector<16x1xf32>
    %77 = arith.divf %75, %76 : vector<16x1xf32>
    %78 = vector.broadcast %70 : vector<16x1xf32> to vector<16x32xf32>
    %79 = arith.subf %62, %78 : vector<16x32xf32>
    %cst_39 = arith.constant 9.99999974E-6 : f32
    %80 = vector.broadcast %cst_39 : f32 to vector<16x1xf32>
    %81 = arith.addf %77, %80 : vector<16x1xf32>
    %82 = math.rsqrt %81 : vector<16x1xf32>
    %83 = vector.broadcast %82 : vector<16x1xf32> to vector<16x32xf32>
    %84 = arith.mulf %79, %83 : vector<16x32xf32>
    %85 = vector.shape_cast %64 : vector<32xf32> to vector<1x32xf32>
    %86 = vector.broadcast %85 : vector<1x32xf32> to vector<16x32xf32>
    %87 = arith.mulf %84, %86 : vector<16x32xf32>
    %88 = vector.shape_cast %66 : vector<32xf32> to vector<1x32xf32>
    %89 = vector.broadcast %88 : vector<1x32xf32> to vector<16x32xf32>
    %90 = arith.addf %87, %89 : vector<16x32xf32>
    %cst_40 = arith.constant 0.000000e+00 : f32
    %91 = vector.broadcast %cst_40 : f32 to vector<16x32xf32>
    %92 = arith.maximumf %90, %91 : vector<16x32xf32>
    %93 = arith.truncf %92 : vector<16x32xf32> to vector<16x32xbf16>
    %cst_41 = arith.constant dense<0.000000e+00> : vector<16x32xf32>
    %94 = tpu.matmul %93, %31, %cst_41 {dimension_numbers = #tpu.dot_dimension_numbers<[1], [0], [0], [1], [0, 0, 1, 1], [], []>} : vector<16x32xbf16>, vector<32x32xbf16>, vector<16x32xf32> -> vector<16x32xf32>
    %95 = arith.addf %0, %94 : vector<16x32xf32>
    %96 = vector.shape_cast %33 : vector<32xf32> to vector<1x32xf32>
    %97 = vector.broadcast %96 : vector<1x32xf32> to vector<16x32xf32>
    %98 = arith.addf %95, %97 : vector<16x32xf32>
    %c1_42 = arith.constant 1 : index
    %c0_43 = arith.constant 0 : index
    %c0_44 = arith.constant 0 : index
    %c0_45 = arith.constant 0 : index
    %99 = vector.load %arg6[%c1_42, %c0_43, %c0_44, %c0_45] : memref<2x2x16x16xbf16, #tpu.memory_space<vmem>>, vector<1x2x16x16xbf16>
    %100 = vector.shape_cast %99 : vector<1x2x16x16xbf16> to vector<2x16x16xbf16>
    %c1_46 = arith.constant 1 : index
    %c0_47 = arith.constant 0 : index
    %101 = vector.load %arg7[%c1_46, %c0_47] : memref<2x32xf32, #tpu.memory_space<vmem>>, vector<1x32xf32>
    %102 = vector.shape_cast %101 : vector<1x32xf32> to vector<32xf32>
    %c2 = arith.constant 2 : index
    %c0_48 = arith.constant 0 : index
    %c0_49 = arith.constant 0 : index
    %103 = vector.load %arg8[%c2, %c0_48, %c0_49] : memref<4x32x32xbf16, #tpu.memory_space<vmem>>, vector<1x32x32xbf16>
    %104 = vector.shape_cast %103 : vector<1x32x32xbf16> to vector<32x32xbf16>
    %c2_50 = arith.constant 2 : index
    %c0_51 = arith.constant 0 : index
    %105 = vector.load %arg9[%c2_50, %c0_51] : memref<4x32xf32, #tpu.memory_space<vmem>>, vector<1x32xf32>
    %106 = vector.shape_cast %105 : vector<1x32xf32> to vector<32xf32>
    %c3 = arith.constant 3 : index
    %c0_52 = arith.constant 0 : index
    %c0_53 = arith.constant 0 : index
    %107 = vector.load %arg8[%c3, %c0_52, %c0_53] : memref<4x32x32xbf16, #tpu.memory_space<vmem>>, vector<1x32x32xbf16>
    %108 = vector.shape_cast %107 : vector<1x32x32xbf16> to vector<32x32xbf16>
    %c3_54 = arith.constant 3 : index
    %c0_55 = arith.constant 0 : index
    %109 = vector.load %arg9[%c3_54, %c0_55] : memref<4x32xf32, #tpu.memory_space<vmem>>, vector<1x32xf32>
    %110 = vector.shape_cast %109 : vector<1x32xf32> to vector<32xf32>
    %c1_56 = arith.constant 1 : index
    %c0_57 = arith.constant 0 : index
    %c0_58 = arith.constant 0 : index
    %111 = vector.load %arg10[%c1_56, %c0_57, %c0_58] : memref<2x2x32xf32, #tpu.memory_space<vmem>>, vector<1x2x32xf32>
    %112 = vector.shape_cast %111 : vector<1x2x32xf32> to vector<2x32xf32>
    %cst_59 = arith.constant 0.000000e+00 : f32
    %113 = vector.broadcast %cst_59 : f32 to vector<16x32xf32>
    %114 = arith.maximumf %19, %113 : vector<16x32xf32>
    %115 = vector.extract_strided_slice %114 {offsets = [0, 0], sizes = [16, 16], strides = [1, 1]} : vector<16x32xf32> to vector<16x16xf32>
    %116 = vector.extract_strided_slice %100 {offsets = [0, 0, 0], sizes = [1, 16, 16], strides = [1, 1, 1]} : vector<2x16x16xbf16> to vector<1x16x16xbf16>
    %117 = vector.shape_cast %116 : vector<1x16x16xbf16> to vector<16x16xbf16>
    %118 = arith.truncf %115 : vector<16x16xf32> to vector<16x16xbf16>
    %cst_60 = arith.constant dense<0.000000e+00> : vector<16x16xf32>
    %119 = tpu.matmul %118, %117, %cst_60 {dimension_numbers = #tpu.dot_dimension_numbers<[1], [0], [0], [1], [0, 0, 1, 1], [], []>} : vector<16x16xbf16>, vector<16x16xbf16>, vector<16x16xf32> -> vector<16x16xf32>
    %120 = vector.extract_strided_slice %114 {offsets = [0, 16], sizes = [16, 16], strides = [1, 1]} : vector<16x32xf32> to vector<16x16xf32>
    %121 = vector.extract_strided_slice %100 {offsets = [1, 0, 0], sizes = [1, 16, 16], strides = [1, 1, 1]} : vector<2x16x16xbf16> to vector<1x16x16xbf16>
    %122 = vector.shape_cast %121 : vector<1x16x16xbf16> to vector<16x16xbf16>
    %123 = arith.truncf %120 : vector<16x16xf32> to vector<16x16xbf16>
    %cst_61 = arith.constant dense<0.000000e+00> : vector<16x16xf32>
    %124 = tpu.matmul %123, %122, %cst_61 {dimension_numbers = #tpu.dot_dimension_numbers<[1], [0], [0], [1], [0, 0, 1, 1], [], []>} : vector<16x16xbf16>, vector<16x16xbf16>, vector<16x16xf32> -> vector<16x16xf32>
    %125 = tpu.concatenate %119, %124 in 1 : vector<16x16xf32>, vector<16x16xf32> -> vector<16x32xf32>
    %126 = vector.shape_cast %102 : vector<32xf32> to vector<1x32xf32>
    %127 = vector.broadcast %126 : vector<1x32xf32> to vector<16x32xf32>
    %128 = arith.addf %125, %127 : vector<16x32xf32>
    %129 = arith.negf %128 : vector<16x32xf32>
    %130 = math.exp %129 : vector<16x32xf32>
    %cst_62 = arith.constant 1.000000e+00 : f32
    %131 = vector.broadcast %cst_62 : f32 to vector<16x32xf32>
    %132 = arith.addf %131, %130 : vector<16x32xf32>
    %133 = arith.divf %131, %132 : vector<16x32xf32>
    %134 = arith.mulf %133, %21 : vector<16x32xf32>
    %135 = arith.truncf %134 : vector<16x32xf32> to vector<16x32xbf16>
    %cst_63 = arith.constant dense<0.000000e+00> : vector<16x32xf32>
    %136 = tpu.matmul %135, %104, %cst_63 {dimension_numbers = #tpu.dot_dimension_numbers<[1], [0], [0], [1], [0, 0, 1, 1], [], []>} : vector<16x32xbf16>, vector<32x32xbf16>, vector<16x32xf32> -> vector<16x32xf32>
    %137 = vector.shape_cast %106 : vector<32xf32> to vector<1x32xf32>
    %138 = vector.broadcast %137 : vector<1x32xf32> to vector<16x32xf32>
    %139 = arith.addf %136, %138 : vector<16x32xf32>
    %140 = vector.extract_strided_slice %112 {offsets = [0, 0], sizes = [1, 32], strides = [1, 1]} : vector<2x32xf32> to vector<1x32xf32>
    %141 = vector.shape_cast %140 : vector<1x32xf32> to vector<32xf32>
    %142 = vector.extract_strided_slice %112 {offsets = [1, 0], sizes = [1, 32], strides = [1, 1]} : vector<2x32xf32> to vector<1x32xf32>
    %143 = vector.shape_cast %142 : vector<1x32xf32> to vector<32xf32>
    %cst_64 = arith.constant dense<0.000000e+00> : vector<16xf32>
    %144 = vector.multi_reduction <add>, %139, %cst_64 [1] : vector<16x32xf32> to vector<16xf32>
    %145 = vector.shape_cast %144 : vector<16xf32> to vector<16x1xf32>
    %cst_65 = arith.constant 3.200000e+01 : f32
    %146 = vector.broadcast %cst_65 : f32 to vector<16x1xf32>
    %147 = arith.divf %145, %146 : vector<16x1xf32>
    %148 = vector.broadcast %147 : vector<16x1xf32> to vector<16x32xf32>
    %149 = arith.subf %139, %148 : vector<16x32xf32>
    %150 = arith.mulf %149, %149 : vector<16x32xf32>
    %cst_66 = arith.constant dense<0.000000e+00> : vector<16xf32>
    %151 = vector.multi_reduction <add>, %150, %cst_66 [1] : vector<16x32xf32> to vector<16xf32>
    %152 = vector.shape_cast %151 : vector<16xf32> to vector<16x1xf32>
    %cst_67 = arith.constant 3.200000e+01 : f32
    %153 = vector.broadcast %cst_67 : f32 to vector<16x1xf32>
    %154 = arith.divf %152, %153 : vector<16x1xf32>
    %155 = vector.broadcast %147 : vector<16x1xf32> to vector<16x32xf32>
    %156 = arith.subf %139, %155 : vector<16x32xf32>
    %cst_68 = arith.constant 9.99999974E-6 : f32
    %157 = vector.broadcast %cst_68 : f32 to vector<16x1xf32>
    %158 = arith.addf %154, %157 : vector<16x1xf32>
    %159 = math.rsqrt %158 : vector<16x1xf32>
    %160 = vector.broadcast %159 : vector<16x1xf32> to vector<16x32xf32>
    %161 = arith.mulf %156, %160 : vector<16x32xf32>
    %162 = vector.shape_cast %141 : vector<32xf32> to vector<1x32xf32>
    %163 = vector.broadcast %162 : vector<1x32xf32> to vector<16x32xf32>
    %164 = arith.mulf %161, %163 : vector<16x32xf32>
    %165 = vector.shape_cast %143 : vector<32xf32> to vector<1x32xf32>
    %166 = vector.broadcast %165 : vector<1x32xf32> to vector<16x32xf32>
    %167 = arith.addf %164, %166 : vector<16x32xf32>
    %cst_69 = arith.constant 0.000000e+00 : f32
    %168 = vector.broadcast %cst_69 : f32 to vector<16x32xf32>
    %169 = arith.maximumf %167, %168 : vector<16x32xf32>
    %170 = arith.truncf %169 : vector<16x32xf32> to vector<16x32xbf16>
    %cst_70 = arith.constant dense<0.000000e+00> : vector<16x32xf32>
    %171 = tpu.matmul %170, %108, %cst_70 {dimension_numbers = #tpu.dot_dimension_numbers<[1], [0], [0], [1], [0, 0, 1, 1], [], []>} : vector<16x32xbf16>, vector<32x32xbf16>, vector<16x32xf32> -> vector<16x32xf32>
    %172 = arith.addf %1, %171 : vector<16x32xf32>
    %173 = vector.shape_cast %110 : vector<32xf32> to vector<1x32xf32>
    %174 = vector.broadcast %173 : vector<1x32xf32> to vector<16x32xf32>
    %175 = arith.addf %172, %174 : vector<16x32xf32>
    %c0_71 = arith.constant 0 : index
    %c0_72 = arith.constant 0 : index
    %c0_73 = arith.constant 0 : index
    %176 = vector.load %arg11[%c0_71, %c0_72, %c0_73] : memref<6x32x32xbf16, #tpu.memory_space<vmem>>, vector<1x32x32xbf16>
    %177 = vector.shape_cast %176 : vector<1x32x32xbf16> to vector<32x32xbf16>
    %c0_74 = arith.constant 0 : index
    %c0_75 = arith.constant 0 : index
    %178 = vector.load %arg12[%c0_74, %c0_75] : memref<6x32xf32, #tpu.memory_space<vmem>>, vector<1x32xf32>
    %179 = vector.shape_cast %178 : vector<1x32xf32> to vector<32xf32>
    %c1_76 = arith.constant 1 : index
    %c0_77 = arith.constant 0 : index
    %c0_78 = arith.constant 0 : index
    %180 = vector.load %arg11[%c1_76, %c0_77, %c0_78] : memref<6x32x32xbf16, #tpu.memory_space<vmem>>, vector<1x32x32xbf16>
    %181 = vector.shape_cast %180 : vector<1x32x32xbf16> to vector<32x32xbf16>
    %c1_79 = arith.constant 1 : index
    %c0_80 = arith.constant 0 : index
    %182 = vector.load %arg12[%c1_79, %c0_80] : memref<6x32xf32, #tpu.memory_space<vmem>>, vector<1x32xf32>
    %183 = vector.shape_cast %182 : vector<1x32xf32> to vector<32xf32>
    %c2_81 = arith.constant 2 : index
    %c0_82 = arith.constant 0 : index
    %c0_83 = arith.constant 0 : index
    %184 = vector.load %arg11[%c2_81, %c0_82, %c0_83] : memref<6x32x32xbf16, #tpu.memory_space<vmem>>, vector<1x32x32xbf16>
    %185 = vector.shape_cast %184 : vector<1x32x32xbf16> to vector<32x32xbf16>
    %c2_84 = arith.constant 2 : index
    %c0_85 = arith.constant 0 : index
    %186 = vector.load %arg12[%c2_84, %c0_85] : memref<6x32xf32, #tpu.memory_space<vmem>>, vector<1x32xf32>
    %187 = vector.shape_cast %186 : vector<1x32xf32> to vector<32xf32>
    %c0_86 = arith.constant 0 : index
    %c0_87 = arith.constant 0 : index
    %c0_88 = arith.constant 0 : index
    %188 = vector.load %arg13[%c0_86, %c0_87, %c0_88] : memref<2x2x32xf32, #tpu.memory_space<vmem>>, vector<1x2x32xf32>
    %189 = vector.shape_cast %188 : vector<1x2x32xf32> to vector<2x32xf32>
    %190 = arith.truncf %98 : vector<16x32xf32> to vector<16x32xbf16>
    %cst_89 = arith.constant dense<0.000000e+00> : vector<16x32xf32>
    %191 = tpu.matmul %190, %177, %cst_89 {dimension_numbers = #tpu.dot_dimension_numbers<[1], [0], [0], [1], [0, 0, 1, 1], [], []>} : vector<16x32xbf16>, vector<32x32xbf16>, vector<16x32xf32> -> vector<16x32xf32>
    %192 = vector.shape_cast %179 : vector<32xf32> to vector<1x32xf32>
    %193 = vector.broadcast %192 : vector<1x32xf32> to vector<16x32xf32>
    %194 = arith.addf %191, %193 : vector<16x32xf32>
    %195 = arith.truncf %194 : vector<16x32xf32> to vector<16x32xbf16>
    %cst_90 = arith.constant dense<0.000000e+00> : vector<16x32xf32>
    %196 = tpu.matmul %195, %181, %cst_90 {dimension_numbers = #tpu.dot_dimension_numbers<[1], [0], [0], [1], [0, 0, 1, 1], [], []>} : vector<16x32xbf16>, vector<32x32xbf16>, vector<16x32xf32> -> vector<16x32xf32>
    %197 = vector.shape_cast %183 : vector<32xf32> to vector<1x32xf32>
    %198 = vector.broadcast %197 : vector<1x32xf32> to vector<16x32xf32>
    %199 = arith.addf %196, %198 : vector<16x32xf32>
    %200 = vector.extract_strided_slice %189 {offsets = [0, 0], sizes = [1, 32], strides = [1, 1]} : vector<2x32xf32> to vector<1x32xf32>
    %201 = vector.shape_cast %200 : vector<1x32xf32> to vector<32xf32>
    %202 = vector.extract_strided_slice %189 {offsets = [1, 0], sizes = [1, 32], strides = [1, 1]} : vector<2x32xf32> to vector<1x32xf32>
    %203 = vector.shape_cast %202 : vector<1x32xf32> to vector<32xf32>
    %cst_91 = arith.constant dense<0.000000e+00> : vector<16xf32>
    %204 = vector.multi_reduction <add>, %199, %cst_91 [1] : vector<16x32xf32> to vector<16xf32>
    %205 = vector.shape_cast %204 : vector<16xf32> to vector<16x1xf32>
    %cst_92 = arith.constant 3.200000e+01 : f32
    %206 = vector.broadcast %cst_92 : f32 to vector<16x1xf32>
    %207 = arith.divf %205, %206 : vector<16x1xf32>
    %208 = vector.broadcast %207 : vector<16x1xf32> to vector<16x32xf32>
    %209 = arith.subf %199, %208 : vector<16x32xf32>
    %210 = arith.mulf %209, %209 : vector<16x32xf32>
    %cst_93 = arith.constant dense<0.000000e+00> : vector<16xf32>
    %211 = vector.multi_reduction <add>, %210, %cst_93 [1] : vector<16x32xf32> to vector<16xf32>
    %212 = vector.shape_cast %211 : vector<16xf32> to vector<16x1xf32>
    %cst_94 = arith.constant 3.200000e+01 : f32
    %213 = vector.broadcast %cst_94 : f32 to vector<16x1xf32>
    %214 = arith.divf %212, %213 : vector<16x1xf32>
    %215 = vector.broadcast %207 : vector<16x1xf32> to vector<16x32xf32>
    %216 = arith.subf %199, %215 : vector<16x32xf32>
    %cst_95 = arith.constant 9.99999974E-6 : f32
    %217 = vector.broadcast %cst_95 : f32 to vector<16x1xf32>
    %218 = arith.addf %214, %217 : vector<16x1xf32>
    %219 = math.rsqrt %218 : vector<16x1xf32>
    %220 = vector.broadcast %219 : vector<16x1xf32> to vector<16x32xf32>
    %221 = arith.mulf %216, %220 : vector<16x32xf32>
    %222 = vector.shape_cast %201 : vector<32xf32> to vector<1x32xf32>
    %223 = vector.broadcast %222 : vector<1x32xf32> to vector<16x32xf32>
    %224 = arith.mulf %221, %223 : vector<16x32xf32>
    %225 = vector.shape_cast %203 : vector<32xf32> to vector<1x32xf32>
    %226 = vector.broadcast %225 : vector<1x32xf32> to vector<16x32xf32>
    %227 = arith.addf %224, %226 : vector<16x32xf32>
    %cst_96 = arith.constant 0.000000e+00 : f32
    %228 = vector.broadcast %cst_96 : f32 to vector<16x32xf32>
    %229 = arith.maximumf %227, %228 : vector<16x32xf32>
    %230 = arith.truncf %229 : vector<16x32xf32> to vector<16x32xbf16>
    %cst_97 = arith.constant dense<0.000000e+00> : vector<16x32xf32>
    %231 = tpu.matmul %230, %185, %cst_97 {dimension_numbers = #tpu.dot_dimension_numbers<[1], [0], [0], [1], [0, 0, 1, 1], [], []>} : vector<16x32xbf16>, vector<32x32xbf16>, vector<16x32xf32> -> vector<16x32xf32>
    %232 = arith.addf %98, %231 : vector<16x32xf32>
    %233 = vector.shape_cast %187 : vector<32xf32> to vector<1x32xf32>
    %234 = vector.broadcast %233 : vector<1x32xf32> to vector<16x32xf32>
    %235 = arith.addf %232, %234 : vector<16x32xf32>
    %c3_98 = arith.constant 3 : index
    %c0_99 = arith.constant 0 : index
    %c0_100 = arith.constant 0 : index
    %236 = vector.load %arg11[%c3_98, %c0_99, %c0_100] : memref<6x32x32xbf16, #tpu.memory_space<vmem>>, vector<1x32x32xbf16>
    %237 = vector.shape_cast %236 : vector<1x32x32xbf16> to vector<32x32xbf16>
    %c3_101 = arith.constant 3 : index
    %c0_102 = arith.constant 0 : index
    %238 = vector.load %arg12[%c3_101, %c0_102] : memref<6x32xf32, #tpu.memory_space<vmem>>, vector<1x32xf32>
    %239 = vector.shape_cast %238 : vector<1x32xf32> to vector<32xf32>
    %c4 = arith.constant 4 : index
    %c0_103 = arith.constant 0 : index
    %c0_104 = arith.constant 0 : index
    %240 = vector.load %arg11[%c4, %c0_103, %c0_104] : memref<6x32x32xbf16, #tpu.memory_space<vmem>>, vector<1x32x32xbf16>
    %241 = vector.shape_cast %240 : vector<1x32x32xbf16> to vector<32x32xbf16>
    %c4_105 = arith.constant 4 : index
    %c0_106 = arith.constant 0 : index
    %242 = vector.load %arg12[%c4_105, %c0_106] : memref<6x32xf32, #tpu.memory_space<vmem>>, vector<1x32xf32>
    %243 = vector.shape_cast %242 : vector<1x32xf32> to vector<32xf32>
    %c5 = arith.constant 5 : index
    %c0_107 = arith.constant 0 : index
    %c0_108 = arith.constant 0 : index
    %244 = vector.load %arg11[%c5, %c0_107, %c0_108] : memref<6x32x32xbf16, #tpu.memory_space<vmem>>, vector<1x32x32xbf16>
    %245 = vector.shape_cast %244 : vector<1x32x32xbf16> to vector<32x32xbf16>
    %c5_109 = arith.constant 5 : index
    %c0_110 = arith.constant 0 : index
    %246 = vector.load %arg12[%c5_109, %c0_110] : memref<6x32xf32, #tpu.memory_space<vmem>>, vector<1x32xf32>
    %247 = vector.shape_cast %246 : vector<1x32xf32> to vector<32xf32>
    %c1_111 = arith.constant 1 : index
    %c0_112 = arith.constant 0 : index
    %c0_113 = arith.constant 0 : index
    %248 = vector.load %arg13[%c1_111, %c0_112, %c0_113] : memref<2x2x32xf32, #tpu.memory_space<vmem>>, vector<1x2x32xf32>
    %249 = vector.shape_cast %248 : vector<1x2x32xf32> to vector<2x32xf32>
    %250 = arith.truncf %175 : vector<16x32xf32> to vector<16x32xbf16>
    %cst_114 = arith.constant dense<0.000000e+00> : vector<16x32xf32>
    %251 = tpu.matmul %250, %237, %cst_114 {dimension_numbers = #tpu.dot_dimension_numbers<[1], [0], [0], [1], [0, 0, 1, 1], [], []>} : vector<16x32xbf16>, vector<32x32xbf16>, vector<16x32xf32> -> vector<16x32xf32>
    %252 = vector.shape_cast %239 : vector<32xf32> to vector<1x32xf32>
    %253 = vector.broadcast %252 : vector<1x32xf32> to vector<16x32xf32>
    %254 = arith.addf %251, %253 : vector<16x32xf32>
    %255 = arith.truncf %254 : vector<16x32xf32> to vector<16x32xbf16>
    %cst_115 = arith.constant dense<0.000000e+00> : vector<16x32xf32>
    %256 = tpu.matmul %255, %241, %cst_115 {dimension_numbers = #tpu.dot_dimension_numbers<[1], [0], [0], [1], [0, 0, 1, 1], [], []>} : vector<16x32xbf16>, vector<32x32xbf16>, vector<16x32xf32> -> vector<16x32xf32>
    %257 = vector.shape_cast %243 : vector<32xf32> to vector<1x32xf32>
    %258 = vector.broadcast %257 : vector<1x32xf32> to vector<16x32xf32>
    %259 = arith.addf %256, %258 : vector<16x32xf32>
    %260 = vector.extract_strided_slice %249 {offsets = [0, 0], sizes = [1, 32], strides = [1, 1]} : vector<2x32xf32> to vector<1x32xf32>
    %261 = vector.shape_cast %260 : vector<1x32xf32> to vector<32xf32>
    %262 = vector.extract_strided_slice %249 {offsets = [1, 0], sizes = [1, 32], strides = [1, 1]} : vector<2x32xf32> to vector<1x32xf32>
    %263 = vector.shape_cast %262 : vector<1x32xf32> to vector<32xf32>
    %cst_116 = arith.constant dense<0.000000e+00> : vector<16xf32>
    %264 = vector.multi_reduction <add>, %259, %cst_116 [1] : vector<16x32xf32> to vector<16xf32>
    %265 = vector.shape_cast %264 : vector<16xf32> to vector<16x1xf32>
    %cst_117 = arith.constant 3.200000e+01 : f32
    %266 = vector.broadcast %cst_117 : f32 to vector<16x1xf32>
    %267 = arith.divf %265, %266 : vector<16x1xf32>
    %268 = vector.broadcast %267 : vector<16x1xf32> to vector<16x32xf32>
    %269 = arith.subf %259, %268 : vector<16x32xf32>
    %270 = arith.mulf %269, %269 : vector<16x32xf32>
    %cst_118 = arith.constant dense<0.000000e+00> : vector<16xf32>
    %271 = vector.multi_reduction <add>, %270, %cst_118 [1] : vector<16x32xf32> to vector<16xf32>
    %272 = vector.shape_cast %271 : vector<16xf32> to vector<16x1xf32>
    %cst_119 = arith.constant 3.200000e+01 : f32
    %273 = vector.broadcast %cst_119 : f32 to vector<16x1xf32>
    %274 = arith.divf %272, %273 : vector<16x1xf32>
    %275 = vector.broadcast %267 : vector<16x1xf32> to vector<16x32xf32>
    %276 = arith.subf %259, %275 : vector<16x32xf32>
    %cst_120 = arith.constant 9.99999974E-6 : f32
    %277 = vector.broadcast %cst_120 : f32 to vector<16x1xf32>
    %278 = arith.addf %274, %277 : vector<16x1xf32>
    %279 = math.rsqrt %278 : vector<16x1xf32>
    %280 = vector.broadcast %279 : vector<16x1xf32> to vector<16x32xf32>
    %281 = arith.mulf %276, %280 : vector<16x32xf32>
    %282 = vector.shape_cast %261 : vector<32xf32> to vector<1x32xf32>
    %283 = vector.broadcast %282 : vector<1x32xf32> to vector<16x32xf32>
    %284 = arith.mulf %281, %283 : vector<16x32xf32>
    %285 = vector.shape_cast %263 : vector<32xf32> to vector<1x32xf32>
    %286 = vector.broadcast %285 : vector<1x32xf32> to vector<16x32xf32>
    %287 = arith.addf %284, %286 : vector<16x32xf32>
    %cst_121 = arith.constant 0.000000e+00 : f32
    %288 = vector.broadcast %cst_121 : f32 to vector<16x32xf32>
    %289 = arith.maximumf %287, %288 : vector<16x32xf32>
    %290 = arith.truncf %289 : vector<16x32xf32> to vector<16x32xbf16>
    %cst_122 = arith.constant dense<0.000000e+00> : vector<16x32xf32>
    %291 = tpu.matmul %290, %245, %cst_122 {dimension_numbers = #tpu.dot_dimension_numbers<[1], [0], [0], [1], [0, 0, 1, 1], [], []>} : vector<16x32xbf16>, vector<32x32xbf16>, vector<16x32xf32> -> vector<16x32xf32>
    %292 = arith.addf %175, %291 : vector<16x32xf32>
    %293 = vector.shape_cast %247 : vector<32xf32> to vector<1x32xf32>
    %294 = vector.broadcast %293 : vector<1x32xf32> to vector<16x32xf32>
    %295 = arith.addf %292, %294 : vector<16x32xf32>
    %c0_123 = arith.constant 0 : index
    %c0_124 = arith.constant 0 : index
    %296 = vector.load %arg14[%c0_123, %c0_124] : memref<16x32xf32, #tpu.memory_space<vmem>>, vector<16x32xf32>
    tpu.vector_store %arg14[%c0_123, %c0_124], %235 {strides = array<i32>} : memref<16x32xf32, #tpu.memory_space<vmem>>, vector<16x32xf32>,
    %c0_125 = arith.constant 0 : index
    %c0_126 = arith.constant 0 : index
    %297 = vector.load %arg15[%c0_125, %c0_126] : memref<16x32xf32, #tpu.memory_space<vmem>>, vector<16x32xf32>
    tpu.vector_store %arg15[%c0_125, %c0_126], %295 {strides = array<i32>} : memref<16x32xf32, #tpu.memory_space<vmem>>, vector<16x32xf32>,
    return
  }
  func.func @transform_0(%arg0: i32) -> (i32, i32) {
    %c0_i32 = arith.constant 0 : i32
    %c0_i32_0 = arith.constant 0 : i32
    return %arg0, %c0_i32 : i32, i32
  }
  func.func @transform_1(%arg0: i32) -> (i32, i32) {
    %c0_i32 = arith.constant 0 : i32
    %c0_i32_0 = arith.constant 0 : i32
    return %arg0, %c0_i32 : i32, i32
  }
  func.func @transform_2(%arg0: i32) -> (i32, i32) {
    %c0_i32 = arith.constant 0 : i32
    %c0_i32_0 = arith.constant 0 : i32
    %c0_i32_1 = arith.constant 0 : i32
    return %c0_i32, %c0_i32_0 : i32, i32
  }
  func.func @transform_3(%arg0: i32) -> (i32, i32) {
    %c0_i32 = arith.constant 0 : i32
    %c0_i32_0 = arith.constant 0 : i32
    %c0_i32_1 = arith.constant 0 : i32
    return %c0_i32, %c0_i32_0 : i32, i32
  }
  func.func @transform_4(%arg0: i32) -> (i32, i32) {
    %c0_i32 = arith.constant 0 : i32
    %c0_i32_0 = arith.constant 0 : i32
    %c0_i32_1 = arith.constant 0 : i32
    return %c0_i32, %c0_i32_0 : i32, i32
  }
  func.func @transform_5(%arg0: i32) -> (i32, i32, i32, i32) {
    %c0_i32 = arith.constant 0 : i32
    %c0_i32_0 = arith.constant 0 : i32
    %c0_i32_1 = arith.constant 0 : i32
    %c0_i32_2 = arith.constant 0 : i32
    %c0_i32_3 = arith.constant 0 : i32
    return %c0_i32, %c0_i32_0, %c0_i32_1, %c0_i32_2 : i32, i32, i32, i32
  }
  func.func @transform_6(%arg0: i32) -> (i32, i32) {
    %c0_i32 = arith.constant 0 : i32
    %c0_i32_0 = arith.constant 0 : i32
    %c0_i32_1 = arith.constant 0 : i32
    return %c0_i32, %c0_i32_0 : i32, i32
  }
  func.func @transform_7(%arg0: i32) -> (i32, i32, i32) {
    %c0_i32 = arith.constant 0 : i32
    %c0_i32_0 = arith.constant 0 : i32
    %c0_i32_1 = arith.constant 0 : i32
    %c0_i32_2 = arith.constant 0 : i32
    return %c0_i32, %c0_i32_0, %c0_i32_1 : i32, i32, i32
  }
  func.func @transform_8(%arg0: i32) -> (i32, i32) {
    %c0_i32 = arith.constant 0 : i32
    %c0_i32_0 = arith.constant 0 : i32
    %c0_i32_1 = arith.constant 0 : i32
    return %c0_i32, %c0_i32_0 : i32, i32
  }
  func.func @transform_9(%arg0: i32) -> (i32, i32, i32) {
    %c0_i32 = arith.constant 0 : i32
    %c0_i32_0 = arith.constant 0 : i32
    %c0_i32_1 = arith.constant 0 : i32
    %c0_i32_2 = arith.constant 0 : i32
    return %c0_i32, %c0_i32_0, %c0_i32_1 : i32, i32, i32
  }
  func.func @transform_10(%arg0: i32) -> (i32, i32, i32) {
    %c0_i32 = arith.constant 0 : i32
    %c0_i32_0 = arith.constant 0 : i32
    %c0_i32_1 = arith.constant 0 : i32
    %c0_i32_2 = arith.constant 0 : i32
    return %c0_i32, %c0_i32_0, %c0_i32_1 : i32, i32, i32
  }
  func.func @transform_11(%arg0: i32) -> (i32, i32) {
    %c0_i32 = arith.constant 0 : i32
    %c0_i32_0 = arith.constant 0 : i32
    %c0_i32_1 = arith.constant 0 : i32
    return %c0_i32, %c0_i32_0 : i32, i32
  }
  func.func @transform_12(%arg0: i32) -> (i32, i32, i32) {
    %c0_i32 = arith.constant 0 : i32
    %c0_i32_0 = arith.constant 0 : i32
    %c0_i32_1 = arith.constant 0 : i32
    %c0_i32_2 = arith.constant 0 : i32
    return %c0_i32, %c0_i32_0, %c0_i32_1 : i32, i32, i32
  }
  func.func @transform_13(%arg0: i32) -> (i32, i32) {
    %c0_i32 = arith.constant 0 : i32
    %c0_i32_0 = arith.constant 0 : i32
    return %arg0, %c0_i32 : i32, i32
  }
  func.func @transform_14(%arg0: i32) -> (i32, i32) {
    %c0_i32 = arith.constant 0 : i32
    %c0_i32_0 = arith.constant 0 : i32
    return %arg0, %c0_i32 : i32, i32
  }
}

</mosaic_0001>

<bundles_post_ra>
// kernel: tpu_custom_call.1
= control target key start
LH: loop header
LB: loop body
LE: loop exit
PB: predicated region body
PF: predicated region fallthrough
CT: control target
= control target key end

     0   :  { %20 = vsyncpa [#allocation3], 0  ;;  %s2390_s0 = inlined_call_operand.hbm [shape: f32[16,32], index: 0, kind: input, shape index: {}]   ;;  %s2391_s1 = inlined_call_operand.hbm [shape: f32[16,32], index: 1, kind: input, shape index: {}]   ;;  %s2392_s2 = inlined_call_operand.hbm [shape: bf16[32,64], index: 2, kind: input, shape index: {}]   ;;  %s2393_s3 = inlined_call_operand.hbm [shape: bf16[32,64], index: 3, kind: input, shape index: {}]   ;;  %s2394_s4 = inlined_call_operand.hbm [shape: f32[2,64], index: 4, kind: input, shape index: {}]   ;;  %s2395_s5 = inlined_call_operand.hbm [shape: bf16[2,2,16,16], index: 5, kind: input, shape index: {}]   ;;  %s2396_s6 = inlined_call_operand.hbm [shape: f32[2,32], index: 6, kind: input, shape index: {}]   ;;  %s2397_s7 = inlined_call_operand.hbm [shape: bf16[4,32,32], index: 7, kind: input, shape index: {}]   ;;  %s2398_s8 = inlined_call_operand.vmem [shape: f32[4,32], index: 8, kind: input, shape index: {}]   ;;  %s2399_s9 = inlined_call_operand.vmem [shape: f32[2,2,32], index: 9, kind: input, shape index: {}]   ;;  %s2400_s10 = inlined_call_operand.hbm [shape: bf16[6,32,32], index: 10, kind: input, shape index: {}]   ;;  %s2401_s11 = inlined_call_operand.vmem [shape: f32[6,32], index: 11, kind: input, shape index: {}]   ;;  %s2402_s12 = inlined_call_operand.vmem [shape: f32[2,2,32], index: 12, kind: input, shape index: {}]   ;;  %s2403_s13 = inlined_call_operand.hbm [shape: f32[16,32], index: 13, kind: output, shape index: {0}]   ;;  %s2404_s14 = inlined_call_operand.hbm [shape: f32[16,32], index: 14, kind: output, shape index: {1}]  }
   0x1   :  { %21 = vsyncpa [#allocation6], 0 }
   0x2   :  { %22 = vsyncpa [#allocation9], 0 }
   0x3   :  { %23 = vsyncpa [#allocation12], 0 }
   0x4   :  { %24 = vsyncpa [#allocation15], 0 }
   0x5   :  { %25 = vsyncpa [#allocation4], 0 }
   0x6   :  { %26 = vsyncpa [#allocation19], 0  ;;  %s2033_s29 = smov [#allocation5]  }
   0x7   :  { %s44_s30 = sshll.u32 %s2033_s29, 4  ;;  %s45_s30 = int_to_ptr.vmem [resolvable:$true] %s44_s30 }
   0x8   :  { %s1807_s15 = scalar_lea.vmem %s45_s30, 256  ;;  %p1812_p1 = scmp.lt.s32.totalorder %s45_s30, %s45_s30 }
   0x9   :  { %p1808_p0 = scmp.ne.s32.totalorder %s45_s30, %s1807_s15  ;;  %p1813_p2 = scmp.lt.s32.totalorder %s1807_s15, %s1807_s15 }
   0xb   :  { %p1814_p3 = por %p1813_p2, %p1812_p1 }
   0xd   :  { %p1815_p4 = pnand %p1814_p3, %p1808_p0 }
   0xf   :  { %1818 = shalt.err (!%p1815_p4)
}
  0x10   :  { %s2034_s16 = smov 128   ;;  %s2035_s17 = smov 8  }
  0x11   :  { %50 = dma.hbm_to_vmem [thread:$0]  %s2391_s1, 256, %s45_s30, [#allocation6], %s2034_s16, %s2034_s16, %s2035_s17  }
  0x12   :  { %s2036_s20 = smov [#allocation8]   ;;  %s2037_s22 = smov [#allocation11]  }
  0x13   :  { %s68_s21 = sshll.u32 %s2036_s20, 4  ;;  %s90_s23 = sshll.u32 %s2037_s22, 4  ;;  %s69_s21 = int_to_ptr.vmem [resolvable:$true] %s68_s21  ;;  %s91_s23 = int_to_ptr.vmem [resolvable:$true] %s90_s23 }
  0x14   :  { %s1827_s24 = scalar_lea.vmem %s69_s21, 256  ;;  %p1832_p6 = scmp.lt.s32.totalorder %s69_s21, %s69_s21 }
  0x15   :  { %p1828_p5 = scmp.ne.s32.totalorder %s69_s21, %s1827_s24  ;;  %p1833_p7 = scmp.lt.s32.totalorder %s1827_s24, %s1827_s24 }
  0x17   :  { %p1834_p8 = por %p1833_p7, %p1832_p6 }
  0x19   :  { %p1835_p9 = pnand %p1834_p8, %p1828_p5 }
  0x1b   :  { %1838 = shalt.err (!%p1835_p9)
}
  0x1c   :  { %s2038_s25 = smov 64   ;;  %s2039_s26 = smov 4  }
  0x1d   :  { %74 = dma.hbm_to_vmem [thread:$0]  %s2393_s3, 256, %s69_s21, [#allocation9], %s2038_s25, %s2038_s25, %s2039_s26  }
  0x1e   :  { %s1847_s1 = scalar_lea.vmem %s91_s23, 512  ;;  %p1852_p11 = scmp.lt.s32.totalorder %s91_s23, %s91_s23 }
  0x1f   :  { %p1848_p10 = scmp.ne.s32.totalorder %s91_s23, %s1847_s1  ;;  %p1853_p12 = scmp.lt.s32.totalorder %s1847_s1, %s1847_s1 }
  0x21   :  { %p1854_p13 = por %p1853_p12, %p1852_p11 }
  0x23   :  { %p1855_p0 = pnand %p1854_p13, %p1848_p10 }
  0x25   :  { %1858 = shalt.err (!%p1855_p0)
}
  0x26   :  { %96 = dma.hbm_to_vmem [thread:$0]  %s2395_s5, 512, %s91_s23, [#allocation12], %s2038_s25, %s2038_s25, %s2039_s26  }
  0x27   :  { %s2040_s15 = smov [#allocation14]   ;;  %s2041_s19 = smov [#allocation2]  }
  0x28   :  { %s112_s18 = sshll.u32 %s2040_s15, 4  ;;  %s32_s3 = sshll.u32 %s2041_s19, 4  ;;  %s113_s18 = int_to_ptr.vmem [resolvable:$true] %s112_s18  ;;  %s33_s3 = int_to_ptr.vmem [resolvable:$true] %s32_s3 }
  0x29   :  { %s1867_s20 = scalar_lea.vmem %s113_s18, 1024  ;;  %p1872_p2 = scmp.lt.s32.totalorder %s113_s18, %s113_s18 }
  0x2a   :  { %p1868_p1 = scmp.ne.s32.totalorder %s113_s18, %s1867_s20  ;;  %p1873_p3 = scmp.lt.s32.totalorder %s1867_s20, %s1867_s20 }
  0x2c   :  { %p1874_p4 = por %p1873_p3, %p1872_p2 }
  0x2e   :  { %p1875_p5 = pnand %p1874_p4, %p1868_p1 }
  0x30   :  { %1878 = shalt.err (!%p1875_p5)
}
  0x31   :  { %118 = dma.hbm_to_vmem [thread:$0]  %s2397_s7, 1024, %s113_s18, [#allocation15], %s2038_s25, %s2038_s25, %s2039_s26  }
  0x32   :  { %s1887_s5 = scalar_lea.vmem %s33_s3, 256  ;;  %p1892_p7 = scmp.lt.s32.totalorder %s33_s3, %s33_s3 }
  0x33   :  { %p1888_p6 = scmp.ne.s32.totalorder %s33_s3, %s1887_s5  ;;  %p1893_p8 = scmp.lt.s32.totalorder %s1887_s5, %s1887_s5 }
  0x35   :  { %p1894_p9 = por %p1893_p8, %p1892_p7 }
  0x37   :  { %p1895_p10 = pnand %p1894_p9, %p1888_p6 }
  0x39   :  { %1898 = shalt.err (!%p1895_p10)
}
  0x3a   :  { %38 = dma.hbm_to_vmem [thread:$0]  %s2390_s0, 256, %s33_s3, [#allocation3], %s2034_s16, %s2034_s16, %s2035_s17  }
  0x3b   :  { %s2042_s27 = smov [#allocation7]   ;;  %s2043_s1 = smov [#allocation10]  }
  0x3c   :  { %s56_s28 = sshll.u32 %s2042_s27, 4  ;;  %s81_s7 = sshll.u32 %s2043_s1, 4  ;;  %s57_s28 = int_to_ptr.vmem [resolvable:$true] %s56_s28  ;;  %s82_s7 = int_to_ptr.vmem [resolvable:$true] %s81_s7 }
  0x3d   :  { %s1907_s29 = scalar_lea.vmem %s57_s28, 256  ;;  %p1912_p12 = scmp.lt.s32.totalorder %s57_s28, %s57_s28 }
  0x3e   :  { %p1908_p11 = scmp.ne.s32.totalorder %s57_s28, %s1907_s29  ;;  %p1913_p13 = scmp.lt.s32.totalorder %s1907_s29, %s1907_s29 }
  0x40   :  { %p1914_p0 = por %p1913_p13, %p1912_p12 }
  0x42   :  { %p1915_p1 = pnand %p1914_p0, %p1908_p11 }
  0x44   :  { %1918 = shalt.err (!%p1915_p1)
}
  0x45   :  { %62 = dma.hbm_to_vmem [thread:$0]  %s2392_s2, 256, %s57_s28, [#allocation6], %s2038_s25, %s2038_s25, %s2039_s26  }
  0x46   :  { %s1927_s0 = scalar_lea.vmem %s82_s7, 32  ;;  %p1932_p3 = scmp.lt.s32.totalorder %s82_s7, %s82_s7 }
  0x47   :  { %p1928_p2 = scmp.ne.s32.totalorder %s82_s7, %s1927_s0  ;;  %p1933_p4 = scmp.lt.s32.totalorder %s1927_s0, %s1927_s0 }
  0x49   :  { %p1934_p5 = por %p1933_p4, %p1932_p3 }
  0x4b   :  { %p1935_p6 = pnand %p1934_p5, %p1928_p2 }
  0x4d   :  { %1938 = shalt.err (!%p1935_p6)
}
  0x4e   :  { %84 = dma.hbm_to_vmem [thread:$0]  %s2394_s4, 32, %s82_s7, [#allocation9]  }
  0x4f   :  { %s2044_s3 = smov [#allocation13]   ;;  %s2045_s21 = smov [#allocation16]  }
  0x50   :  { %s103_s20 = sshll.u32 %s2044_s3, 4  ;;  %s128_s22 = sshll.u32 %s2045_s21, 4  ;;  %s104_s20 = int_to_ptr.vmem [resolvable:$true] %s103_s20  ;;  %s129_s22 = int_to_ptr.vmem [resolvable:$true] %s128_s22 }
  0x51   :  { %s1947_s5 = scalar_lea.vmem %s104_s20, 32  ;;  %p1952_p8 = scmp.lt.s32.totalorder %s104_s20, %s104_s20 }
  0x52   :  { %p1948_p7 = scmp.ne.s32.totalorder %s104_s20, %s1947_s5  ;;  %p1953_p9 = scmp.lt.s32.totalorder %s1947_s5, %s1947_s5 }
  0x54   :  { %p1954_p10 = por %p1953_p9, %p1952_p8 }
  0x56   :  { %p1955_p11 = pnand %p1954_p10, %p1948_p7 }
  0x58   :  { %1958 = shalt.err (!%p1955_p11)
}
  0x59   :  { %106 = dma.hbm_to_vmem [thread:$0]  %s2396_s6, 32, %s104_s20, [#allocation12]  }
  0x5a   :  { %s1967_s24 = scalar_lea.vmem %s129_s22, 1536  ;;  %p1972_p13 = scmp.lt.s32.totalorder %s129_s22, %s129_s22 }
  0x5b   :  { %p1968_p12 = scmp.ne.s32.totalorder %s129_s22, %s1967_s24  ;;  %p1973_p0 = scmp.lt.s32.totalorder %s1967_s24, %s1967_s24 }
  0x5d   :  { %p1974_p1 = por %p1973_p0, %p1972_p13 }
  0x5f   :  { %p1975_p2 = pnand %p1974_p1, %p1968_p12 }
  0x61   :  { %1978 = shalt.err (!%p1975_p2)
}
  0x62   :  { %134 = dma.hbm_to_vmem [thread:$0]  %s2400_s10, 1536, %s129_s22, [#allocation15], %s2038_s25, %s2038_s25, %s2039_s26  }
  0x63   :  { %2019 = dma.done.wait [#allocation3], 256  }
  0x64   :  { %2020 = vsyncadd [#allocation3], 4294967040 }
  0x65   :  { %2021 = dma.done.wait [#allocation6], 512  }
  0x66   :  { %2022 = vsyncadd [#allocation6], 4294966784 }
  0x67   :  { %2023 = dma.done.wait [#allocation9], 288  }
  0x68   :  { %2024 = vsyncadd [#allocation9], 4294967008 }
  0x69   :  { %2025 = dma.done.wait [#allocation12], 544  }
  0x6a   :  { %2026 = vsyncadd [#allocation12], 4294966752 }
  0x6b   :  { %2027 = dma.done.wait [#allocation15], 2560  }
  0x6c   :  { %2028 = vsyncadd [#allocation15], 4294964736  ;;  %v2046_v0 = vmov 0.0   ;;  %vm2047_vm0 = vmmov 0   ;;  %v1739_v1 = vld [vmem:[#allocation8 + $0x8] sm:$0xff]   ;;  %v1740_v2 = vld [vmem:[#allocation8] sm:$0xff]  }
  0x6d   :  { %1606 = vmatprep.subr.bf16.mxu1 %v2046_v0  ;;  %1610 = vmatprep.mubr.msk.bf16.mxu1 %vm2047_vm0, %v2046_v0  ;;  %v2183_v3 = vld [vmem:[#allocation5] sm:$0xff]  ;;  %v2185_v4 = vld [vmem:[#allocation5 + $0x8] sm:$0xff]  ;;  %v1741_v5 = vld [vmem:[#allocation7 + $0x8] sm:$0xff]   ;;  %vm193_vm1 = vcmask 261120   ;;  %vm330_vm2 = vcmask 130048   ;;  %s2048_s6 = smov 112  }
  0x6e   :  { %1598 = vmatprep.subr.bf16.mxu0 %v2046_v0  ;;  %1602 = vmatprep.mubr.msk.bf16.mxu0 %vm2047_vm0, %v2046_v0  ;;  %v1742_v6 = vld [vmem:[#allocation7] sm:$0xff]   ;;  %v242_v7 = vpack.c.bf16 %v2185_v4, %v2183_v3  ;;  %v2198_v9 = vld [vmem:[#allocation2 + $0x8] sm:$0xff]  ;;  %s2049_s10 = smov 16   ;;  %s2050_s28 = smov 96  }
  0x6f   :  { %1607 = vmatpush3.bf16.msra.mxu1 %v1739_v1  ;;  %1599 = vmatpush3.bf16.msra.mxu0 %v1741_v5  ;;  %v2196_v8 = vld [vmem:[#allocation2] sm:$0xff]  ;;  %v1744_v12 = vld [vmem:[#allocation11 + $0x8] sm:$0xff]   ;;  %s2051_s1 = smov 80  }
  0x70   :  { %1608 = vmatprep.subr.bf16.mxu1 %v2046_v0  ;;  %1600 = vmatprep.subr.bf16.mxu0 %v2046_v0  ;;  %v175_v10 = vpack.c.bf16 %v2198_v9, %v2196_v8  ;;  %v1743_v11 = vld [vmem:[#allocation11] sm:$0xff]   ;;  %v1494_v13 = vld [vmem:[#allocation10 + $0x1] ss:$0 sm:$0xff]  ;;  %v1745_v36 = vld [vmem:[#allocation14 + $0x8] sm:$0xff]  }
  0x71   :  { %v1746_v37 = vld [vmem:[#allocation14] sm:$0xff]   ;;  %v1502_v38 = vld [vmem:[#allocation13] ss:$0 sm:$0xff]  ;;  %v1490_v51 = vld [vmem:[#allocation10] ss:$0 sm:$0xff] }
  0x72   :  { %v1505_v59 = vld [vmem:[%s2398_s8] ss:$0 sm:$0xff] }
  0x73   :  { %1609 = vmatpush3.bf16.msra.mxu1 %v1740_v2  ;;  %1601 = vmatpush3.bf16.msra.mxu0 %v1742_v6 }
  0x74   :  { %1620 = vmatprep.subr.bf16.mxu1 %v2046_v0  ;;  %1614 = vmatprep.subr.bf16.mxu0 %v2046_v0 }
  0x76   :  { %1611 = vmatmul.mubr.msk.bf16.vlgmr.msra.gmra.mxu1 %vm193_vm1, %v242_v7  ;;  %1603 = vmatmul.mubr.msk.bf16.vlgmr.msra.gmra.mxu0 %vm193_vm1, %v175_v10 }
  0x77   :  { %1622 = vmatprep.mubr.msk.bf16.mxu1 %vm2047_vm0, %v2046_v0  ;;  %1616 = vmatprep.mubr.msk.bf16.mxu0 %vm2047_vm0, %v2046_v0 }
  0x78   :  { %1615 = vmatpush3.bf16.msra.mxu0 %v1743_v11  ;;  %1621 = vmatpush3.bf16.msra.mxu1 %v1744_v12 }
  0x79   :  { %1626 = vmatprep.subr.bf16.mxu0 %v2046_v0  ;;  %1634 = vmatprep.subr.bf16.mxu1 %v2046_v0 }
 0x136   :  { %v297_v14 = vpop.f32.mrf.mxu1  ;;  %v231_v23 = vpop.f32.mrf.mxu0 }
 0x137   :  { %v2207_v16 = vadd.f32 %v1494_v13, %v297_v14  ;;  %v232_v53 = vadd.f32 %v1490_v51, %v231_v23 }
 0x138   :  { %v1612_v15 = vpop.f32.mrf.mxu1  ;;  %v1604_v24 = vpop.f32.mrf.mxu0 }
 0x139   :  { %v321_v20 = vmax.f32 %v2207_v16, 0.0 }
 0x13a   :  { %v300_v17 = vpop.f32.mrf.mxu1  ;;  %v234_v25 = vpop.f32.mrf.mxu0 }
 0x13b   :  { %v2209_v18 = vadd.f32 %v1494_v13, %v300_v17  ;;  %v235_v54 = vadd.f32 %v1490_v51, %v234_v25  ;;  %v1748_v25 = vld [vmem:[#allocation14 + $0x18] sm:$0xff]  }
 0x13c   :  { %v1613_v19 = vpop.f32.mrf.mxu1  ;;  %v1605_v26 = vpop.f32.mrf.mxu0  ;;  %v1750_v51 = vld [vmem:[#allocation11 + $0x18] sm:$0xff]  }
 0x13d   :  { %v322_v21 = vmax.f32 %v2209_v18, 0.0  ;;  %v646_v23 = vmax.f32 %v235_v54, 0.0  ;;  %v1749_v26 = vld [vmem:[#allocation14 + $0x10] sm:$0xff]  }
 0x13f   :  { %v323_v22 = vpack.c.bf16 %v322_v21, %v321_v20  ;;  %v1747_v21 = vld [vmem:[#allocation11 + $0x10] sm:$0xff]  }
 0x141   :  { %376 = vrot.lane.b32.xlu0 %v323_v22, %s2048_s6  ;;  %1617 = vmatmul.mubr.msk.bf16.vlgmr.msra.gmra.mxu0 %vm330_vm2, %v323_v22  ;;  %v645_v22 = vmax.f32 %v232_v53, 0.0 }
 0x142   :  { %1630 = vmatprep.mubr.msk.bf16.mxu0 %vm2047_vm0, %v2046_v0  ;;  %1627 = vmatpush3.bf16.msra.mxu0 %v1745_v36 }
 0x143   :  { %1628 = vmatprep.subr.bf16.mxu0 %v2046_v0  ;;  %v647_v24 = vpack.c.bf16 %v646_v23, %v645_v22 }
 0x146   :  { %1629 = vmatpush3.bf16.msra.mxu0 %v1746_v37  ;;  %v320_v37 = vld [vmem:[%s2399_s9] sm:$0x3] }
 0x147   :  { %1642 = vmatprep.subr.bf16.mxu0 %v2046_v0 }
 0x1b3   :  { %v377_v27 = vpop.permute.xlu0 %376 }
 0x1b4   :  { %1623 = vmatmul.mubr.msk.bf16.vlgmr.msra.gmra.mxu1 %vm330_vm2, %v377_v27 }
 0x1b5   :  { %1638 = vmatprep.mubr.msk.bf16.mxu1 %vm2047_vm0, %v2046_v0  ;;  %1635 = vmatpush3.bf16.msra.mxu1 %v1748_v25 }
 0x1b6   :  { %1636 = vmatprep.subr.bf16.mxu1 %v2046_v0 }
 0x1b9   :  { %1637 = vmatpush3.bf16.msra.mxu1 %v1749_v26 }
 0x1ba   :  { %1648 = vmatprep.subr.bf16.mxu1 %v2046_v0 }
 0x201   :  { %v368_v28 = vpop.f32.mrf.mxu0 }
 0x203   :  { %v1618_v29 = vpop.f32.mrf.mxu0 }
 0x205   :  { %v371_v30 = vpop.f32.mrf.mxu0 }
 0x207   :  { %v1619_v31 = vpop.f32.mrf.mxu0 }
 0x274   :  { %v421_v32 = vpop.f32.mrf.mxu1 }
 0x275   :  { %430 = vrot.lane.b32.xlu0 %v421_v32, %s2049_s10  ;;  %v546_v32 = vlaneseq }
 0x276   :  { %v1624_v33 = vpop.f32.mrf.mxu1 }
 0x278   :  { %v424_v34 = vpop.f32.mrf.mxu1 }
 0x279   :  { %432 = vrot.lane.b32.xlu1 %v424_v34, %s2049_s10 }
 0x27a   :  { %v1625_v35 = vpop.f32.mrf.mxu1 }
 0x27b   :  { %v547_v35 = vshrl.u32 %v546_v32, 7  ;;  %v1512_v32 = vld [vmem:[%s2398_s8 + $0x1] ss:$0 sm:$0xff] }
 0x27d   :  { %v2242_v36 = vsub.s32 0, %v547_v35 }
 0x2e7   :  { %v431_v39 = vpop.permute.xlu0 %430 }
 0x2e8   :  { %v436_v40 = vsel %vm330_vm2, %v368_v28, %v431_v39  ;;  %v2248_v39 = vsub.s32 1, %v547_v35 }
 0x2e9   :  { %v442_v41 = vadd.f32 %v1502_v38, %v436_v40 }
 0x2eb   :  { %v1503_v42 = vmul.f32 -1.442695, %v442_v41  ;;  %v433_v43 = vpop.permute.xlu1 %432 }
 0x2ec   :  { %v437_v44 = vsel %vm330_vm2, %v371_v30, %v433_v43  ;;  %v555_v43 = vrot.slane %v320_v37, %v2248_v39 }
 0x2ed   :  { %1767 = vpow2.f32 %v1503_v42  ;;  %v443_v45 = vadd.f32 %v1502_v38, %v437_v44  ;;  %v549_v38 = vrot.slane %v320_v37, %v2242_v36 }
 0x2ef   :  { %v1504_v46 = vmul.f32 -1.442695, %v443_v45 }
 0x2f1   :  { %1769 = vpow2.f32 %v1504_v46 }
 0x2fa   :  { %v1768_v47 = vpop.eup %1767 }
 0x2fb   :  { %v450_v48 = vadd.f32 1.0, %v1768_v47 }
 0x2fd   :  { %1771 = vrcp.f32 %v450_v48 }
 0x2fe   :  { %v1770_v49 = vpop.eup %1769 }
 0x2ff   :  { %v451_v50 = vadd.f32 1.0, %v1770_v49 }
 0x301   :  { %1773 = vrcp.f32 %v451_v50 }
 0x30a   :  { %v1772_v52 = vpop.eup %1771 }
 0x30b   :  { %v456_v56 = vmul.f32 %v1772_v52, %v232_v53 }
 0x30e   :  { %v1774_v55 = vpop.eup %1773 }
 0x30f   :  { %v457_v57 = vmul.f32 %v1774_v55, %v235_v54 }
 0x311   :  { %v458_v58 = vpack.c.bf16 %v457_v57, %v456_v56 }
 0x313   :  { %1631 = vmatmul.mubr.msk.bf16.vlgmr.msra.gmra.mxu0 %vm193_vm1, %v458_v58 }
 0x314   :  { %1644 = vmatprep.mubr.msk.bf16.mxu0 %vm2047_vm0, %v2046_v0  ;;  %1643 = vmatpush3.bf16.msra.mxu0 %v1747_v21 }
 0x315   :  { %1654 = vmatprep.subr.bf16.mxu0 %v2046_v0 }
 0x3d3   :  { %v512_v60 = vpop.f32.mrf.mxu0 }
 0x3d4   :  { %v513_v61 = vadd.f32 %v1505_v59, %v512_v60 }
 0x3d5   :  { %v1632_v62 = vpop.f32.mrf.mxu0 }
 0x3d6   :  { %v519_v63 = vsel %vm193_vm1, %v513_v61, 0.0 }
 0x3d7   :  { %520 = vadd.xlane.f32.xlu1 %v519_v63  ;;  %v515_v1 = vpop.f32.mrf.mxu0 }
 0x3d8   :  { %v516_v2 = vadd.f32 %v1505_v59, %v515_v1 }
 0x3d9   :  { %v1633_v5 = vpop.f32.mrf.mxu0 }
 0x3da   :  { %v522_v6 = vsel %vm193_vm1, %v516_v2, 0.0  ;;  %v1751_v5 = vld [vmem:[#allocation14 + $0x28] sm:$0xff]  }
 0x3db   :  { %523 = vadd.xlane.f32.xlu0 %v522_v6  ;;  %v1752_v6 = vld [vmem:[#allocation14 + $0x20] sm:$0xff]  }
 0x460   :  { %v521_v7 = vpop.xlane.xlu1 %520 }
 0x461   :  { %v526_v10 = vmul.f32 0.03125, %v521_v7  ;;  %v1518_v7 = vld [vmem:[#allocation13 + $0x1] ss:$0 sm:$0xff] }
 0x463   :  { %v528_v11 = vsub.f32 %v513_v61, %v526_v10 }
 0x464   :  { %v524_v12 = vpop.xlane.xlu0 %523 }
 0x465   :  { %v527_v13 = vmul.f32 0.03125, %v524_v12  ;;  %v530_v14 = vmul.f32 %v528_v11, %v528_v11 }
 0x467   :  { %v529_v15 = vsub.f32 %v516_v2, %v527_v13  ;;  %v532_v17 = vsel %vm193_vm1, %v530_v14, 0.0 }
 0x468   :  { %533 = vadd.xlane.f32.xlu0 %v532_v17 }
 0x469   :  { %v531_v19 = vmul.f32 %v529_v15, %v529_v15 }
 0x46b   :  { %v535_v20 = vsel %vm193_vm1, %v531_v19, 0.0 }
 0x46c   :  { %536 = vadd.xlane.f32.xlu1 %v535_v20 }
 0x47d   :  { %649 = vrot.lane.b32.xlu1 %v647_v24, %s2050_s28 }
 0x47e   :  { %701 = vrot.lane.b32.xlu0 %v647_v24, %s2051_s1  ;;  %s2052_s1 = smov [#allocation17]  }
 0x47f   :  { %s1458_s7 = sshll.u32 %s2052_s1, 4  ;;  %s1459_s7 = int_to_ptr.vmem [resolvable:$true] %s1458_s7 }
 0x480   :  { %p1984_p4 = scmp.lt.s32.totalorder %s1459_s7, %s1459_s7 }
 0x4f1   :  { %v534_v27 = vpop.xlane.xlu0 %533 }
 0x4f2   :  { %v538_v28 = vmul.f32 0.03125, %v534_v27 }
 0x4f4   :  { %v540_v29 = vadd.f32 1e-05, %v538_v28  ;;  %v1753_v28 = vld [vmem:[#allocation16 + $0x8] sm:$0xff]  }
 0x4f5   :  { %v537_v30 = vpop.xlane.xlu1 %536  ;;  %v702_v53 = vpop.permute.xlu0 %701 }
 0x4f6   :  { %1775 = vrsqrt.f32 %v540_v29  ;;  %v539_v31 = vmul.f32 0.03125, %v537_v30 }
 0x4f8   :  { %v541_v33 = vadd.f32 1e-05, %v539_v31 }
 0x4f9   :  { %v650_v34 = vpop.permute.xlu1 %649 }
 0x4fa   :  { %1777 = vrsqrt.f32 %v541_v33  ;;  %1645 = vmatmul.mubr.msk.bf16.vlgmr.msra.gmra.mxu0 %vm330_vm2, %v650_v34  ;;  %v1754_v33 = vld [vmem:[#allocation16] sm:$0xff]  }
 0x4fb   :  { %1658 = vmatprep.mubr.msk.bf16.mxu0 %vm2047_vm0, %v2046_v0  ;;  %1655 = vmatpush3.bf16.msra.mxu0 %v1751_v5 }
 0x4fc   :  { %1656 = vmatprep.subr.bf16.mxu0 %v2046_v0 }
 0x4ff   :  { %1657 = vmatpush3.bf16.msra.mxu0 %v1752_v6 }
 0x500   :  { %1670 = vmatprep.subr.bf16.mxu0 %v2046_v0 }
 0x503   :  { %v1776_v40 = vpop.eup %1775 }
 0x504   :  { %v544_v41 = vmul.f32 %v1776_v40, %v528_v11 }
 0x506   :  { %v550_v42 = vmul.f32 %v549_v38, %v544_v41 }
 0x507   :  { %v1778_v44 = vpop.eup %1777 }
 0x508   :  { %v545_v45 = vmul.f32 %v1778_v44, %v529_v15  ;;  %v556_v47 = vadd.f32 %v555_v43, %v550_v42 }
 0x50a   :  { %v551_v46 = vmul.f32 %v549_v38, %v545_v45  ;;  %v558_v49 = vmax.f32 %v556_v47, 0.0  ;;  %v1529_v47 = vld [vmem:[%s2401_s11] ss:$0 sm:$0xff] }
 0x50c   :  { %v557_v48 = vadd.f32 %v555_v43, %v551_v46 }
 0x50e   :  { %v559_v50 = vmax.f32 %v557_v48, 0.0 }
 0x510   :  { %v560_v52 = vpack.c.bf16 %v559_v50, %v558_v49 }
 0x512   :  { %1639 = vmatmul.mubr.msk.bf16.vlgmr.msra.gmra.mxu1 %vm193_vm1, %v560_v52 }
 0x513   :  { %1649 = vmatpush3.bf16.msra.mxu1 %v1750_v51  ;;  %1650 = vmatprep.mubr.msk.bf16.mxu1 %vm2047_vm0, %v2046_v0 }
 0x514   :  { %1662 = vmatprep.subr.bf16.mxu1 %v2046_v0 }
 0x51a   :  { %1651 = vmatmul.mubr.msk.bf16.vlgmr.msra.gmra.mxu1 %vm330_vm2, %v702_v53 }
 0x51b   :  { %1666 = vmatprep.mubr.msk.bf16.mxu1 %vm2047_vm0, %v2046_v0 }
 0x5ba   :  { %v694_v54 = vpop.f32.mrf.mxu0 }
 0x5bc   :  { %v1646_v55 = vpop.f32.mrf.mxu0 }
 0x5be   :  { %v697_v56 = vpop.f32.mrf.mxu0 }
 0x5c0   :  { %v1647_v57 = vpop.f32.mrf.mxu0 }
 0x5d2   :  { %v610_v58 = vpop.f32.mrf.mxu1 }
 0x5d3   :  { %v617_v31 = vadd.f32 %v610_v58, %v2196_v8 }
 0x5d4   :  { %v1640_v59 = vpop.f32.mrf.mxu1 }
 0x5d5   :  { %v2279_v35 = vadd.f32 %v1512_v32, %v617_v31 }
 0x5d6   :  { %v613_v60 = vpop.f32.mrf.mxu1 }
 0x5d7   :  { %v618_v29 = vadd.f32 %v613_v60, %v2198_v9  ;;  %v1521_v9 = vld [vmem:[%s2398_s8 + $0x2] ss:$0 sm:$0xff] }
 0x5d8   :  { %v1641_v61 = vpop.f32.mrf.mxu1 }
 0x5d9   :  { %v2276_v34 = vadd.f32 %v1512_v32, %v618_v29  ;;  %v1759_v29 = vld [vmem:[#allocation16 + $0x38] sm:$0xff]  }
 0x5da   :  { %v746_v62 = vpop.f32.mrf.mxu1 }
 0x5db   :  { %755 = vrot.lane.b32.xlu1 %v746_v62, %s2049_s10  ;;  %v975_v8 = vpack.c.bf16 %v2276_v34, %v2279_v35 }
 0x5dc   :  { %v1652_v63 = vpop.f32.mrf.mxu1 }
 0x5de   :  { %v749_v1 = vpop.f32.mrf.mxu1 }
 0x5df   :  { %783 = vrot.lane.b32.xlu1 %v2207_v16, %s2050_s28  ;;  %757 = vrot.lane.b32.xlu0 %v749_v1, %s2049_s10  ;;  %v1755_v1 = vld [vmem:[#allocation14 + $0x38] sm:$0xff]  }
 0x5e0   :  { %v1653_v2 = vpop.f32.mrf.mxu1  ;;  %1663 = vmatpush3.bf16.msra.mxu1 %v1755_v1 }
 0x5e1   :  { %v1756_v2 = vld [vmem:[#allocation14 + $0x30] sm:$0xff]   ;;  %1664 = vmatprep.subr.bf16.mxu1 %v2046_v0 }
 0x5e3   :  { %785 = vrot.lane.b32.xlu0 %v2209_v18, %s2050_s28 }
 0x5e4   :  { %1665 = vmatpush3.bf16.msra.mxu1 %v1756_v2 }
 0x5e5   :  { %1678 = vmatprep.subr.bf16.mxu1 %v2046_v0 }
 0x64d   :  { %v756_v10 = vpop.permute.xlu1 %755 }
 0x64e   :  { %v761_v11 = vsel %vm330_vm2, %v694_v54, %v756_v10 }
 0x64f   :  { %v767_v12 = vadd.f32 %v1518_v7, %v761_v11 }
 0x651   :  { %v1519_v16 = vmul.f32 -1.442695, %v767_v12  ;;  %v758_v13 = vpop.permute.xlu0 %757  ;;  %v784_v24 = vpop.permute.xlu1 %783 }
 0x652   :  { %v762_v14 = vsel %vm330_vm2, %v697_v56, %v758_v13 }
 0x653   :  { %1779 = vpow2.f32 %v1519_v16  ;;  %v768_v15 = vadd.f32 %v1518_v7, %v762_v14  ;;  %v1513_v16 = vld [vmem:[%s2399_s9 + $0x2] sm:$0x3] }
 0x654   :  { %v881_v13 = vrot.slane %v1513_v16, %v2242_v36 }
 0x655   :  { %v1520_v18 = vmul.f32 -1.442695, %v768_v15  ;;  %v786_v25 = vpop.permute.xlu0 %785 }
 0x657   :  { %1781 = vpow2.f32 %v1520_v18 }
 0x660   :  { %v1780_v17 = vpop.eup %1779 }
 0x661   :  { %v775_v19 = vadd.f32 1.0, %v1780_v17  ;;  %v887_v17 = vrot.slane %v1513_v16, %v2248_v39 }
 0x663   :  { %1783 = vrcp.f32 %v775_v19 }
 0x664   :  { %v1782_v20 = vpop.eup %1781 }
 0x665   :  { %v776_v21 = vadd.f32 1.0, %v1782_v20 }
 0x667   :  { %1785 = vrcp.f32 %v776_v21 }
 0x670   :  { %v1784_v22 = vpop.eup %1783 }
 0x671   :  { %v789_v26 = vmul.f32 %v1784_v22, %v784_v24 }
 0x674   :  { %v1786_v23 = vpop.eup %1785 }
 0x675   :  { %v790_v27 = vmul.f32 %v1786_v23, %v786_v25 }
 0x677   :  { %v791_v30 = vpack.c.bf16 %v790_v27, %v789_v26  ;;  %v1757_v26 = vld [vmem:[#allocation16 + $0x18] sm:$0xff]  }
 0x679   :  { %1659 = vmatmul.mubr.msk.bf16.vlgmr.msra.gmra.mxu0 %vm193_vm1, %v791_v30  ;;  %v1760_v30 = vld [vmem:[#allocation16 + $0x30] sm:$0xff]  }
 0x67a   :  { %1671 = vmatpush3.bf16.msra.mxu0 %v1753_v28  ;;  %1674 = vmatprep.mubr.msk.bf16.mxu0 %vm2047_vm0, %v2046_v0  ;;  %v1758_v28 = vld [vmem:[#allocation16 + $0x10] sm:$0xff]  }
 0x67b   :  { %1672 = vmatprep.subr.bf16.mxu0 %v2046_v0 }
 0x67e   :  { %1673 = vmatpush3.bf16.msra.mxu0 %v1754_v33 }
 0x67f   :  { %1686 = vmatprep.subr.bf16.mxu0 %v2046_v0 }
 0x681   :  { %1675 = vmatmul.mubr.msk.bf16.vlgmr.msra.gmra.mxu0 %vm193_vm1, %v975_v8  ;;  %v1528_v8 = vld [vmem:[%s2398_s8 + $0x3] ss:$0 sm:$0xff] }
 0x682   :  { %1690 = vmatprep.mubr.msk.bf16.mxu0 %vm2047_vm0, %v2046_v0 }
 0x739   :  { %v845_v37 = vpop.f32.mrf.mxu0 }
 0x73a   :  { %v846_v38 = vadd.f32 %v1521_v9, %v845_v37 }
 0x73b   :  { %v1660_v40 = vpop.f32.mrf.mxu0 }
 0x73c   :  { %v852_v41 = vsel %vm193_vm1, %v846_v38, 0.0  ;;  %v1533_v40 = vld [vmem:[%s2401_s11 + $0x1] ss:$0 sm:$0xff] }
 0x73d   :  { %853 = vadd.xlane.f32.xlu1 %v852_v41  ;;  %v848_v42 = vpop.f32.mrf.mxu0 }
 0x73e   :  { %v849_v43 = vadd.f32 %v1521_v9, %v848_v42 }
 0x73f   :  { %v1661_v44 = vpop.f32.mrf.mxu0 }
 0x740   :  { %v855_v45 = vsel %vm193_vm1, %v849_v43, 0.0 }
 0x741   :  { %856 = vadd.xlane.f32.xlu0 %v855_v45  ;;  %v1029_v46 = vpop.f32.mrf.mxu0 }
 0x742   :  { %v1030_v50 = vadd.f32 %v1529_v47, %v1029_v46 }
 0x743   :  { %v1676_v48 = vpop.f32.mrf.mxu0 }
 0x745   :  { %v1032_v49 = vpop.f32.mrf.mxu0 }
 0x746   :  { %v1033_v51 = vadd.f32 %v1529_v47, %v1032_v49 }
 0x747   :  { %v1677_v52 = vpop.f32.mrf.mxu0 }
 0x748   :  { %v1036_v53 = vpack.c.bf16 %v1033_v51, %v1030_v50 }
 0x7c6   :  { %v854_v54 = vpop.xlane.xlu1 %853 }
 0x7c7   :  { %v858_v55 = vmul.f32 0.03125, %v854_v54 }
 0x7c9   :  { %v860_v56 = vsub.f32 %v846_v38, %v858_v55 }
 0x7ca   :  { %v857_v57 = vpop.xlane.xlu0 %856 }
 0x7cb   :  { %v859_v58 = vmul.f32 0.03125, %v857_v57  ;;  %v862_v59 = vmul.f32 %v860_v56, %v860_v56 }
 0x7cd   :  { %v861_v60 = vsub.f32 %v849_v43, %v859_v58  ;;  %v864_v61 = vsel %vm193_vm1, %v862_v59, 0.0 }
 0x7ce   :  { %865 = vadd.xlane.f32.xlu0 %v864_v61  ;;  %v1762_v61 = vld [vmem:[#allocation16 + $0x20] sm:$0xff]  }
 0x7cf   :  { %v863_v62 = vmul.f32 %v861_v60, %v861_v60 }
 0x7d1   :  { %v867_v63 = vsel %vm193_vm1, %v863_v62, 0.0 }
 0x7d2   :  { %868 = vadd.xlane.f32.xlu1 %v867_v63  ;;  %v1542_v63 = vld [vmem:[%s2401_s11 + $0x3] ss:$0 sm:$0xff] }
 0x857   :  { %v866_v5 = vpop.xlane.xlu0 %865 }
 0x858   :  { %v870_v6 = vmul.f32 0.03125, %v866_v5 }
 0x85a   :  { %v872_v7 = vadd.f32 1e-05, %v870_v6 }
 0x85b   :  { %v869_v10 = vpop.xlane.xlu1 %868 }
 0x85c   :  { %1787 = vrsqrt.f32 %v872_v7  ;;  %v871_v11 = vmul.f32 0.03125, %v869_v10 }
 0x85e   :  { %v873_v12 = vadd.f32 1e-05, %v871_v11 }
 0x860   :  { %1789 = vrsqrt.f32 %v873_v12 }
 0x869   :  { %v1788_v14 = vpop.eup %1787 }
 0x86a   :  { %v876_v15 = vmul.f32 %v1788_v14, %v860_v56 }
 0x86c   :  { %v882_v18 = vmul.f32 %v881_v13, %v876_v15 }
 0x86d   :  { %v1790_v19 = vpop.eup %1789 }
 0x86e   :  { %v877_v20 = vmul.f32 %v1790_v19, %v861_v60  ;;  %v888_v22 = vadd.f32 %v887_v17, %v882_v18  ;;  %v1761_v60 = vld [vmem:[#allocation16 + $0x28] sm:$0xff]   ;;  %v974_v18 = vld [vmem:[%s2402_s12] sm:$0x3] }
 0x86f   :  { %1687 = vmatpush3.bf16.msra.mxu0 %v1761_v60 }
 0x870   :  { %v883_v21 = vmul.f32 %v881_v13, %v877_v20  ;;  %v890_v24 = vmax.f32 %v888_v22, 0.0  ;;  %1688 = vmatprep.subr.bf16.mxu0 %v2046_v0  ;;  %v1132_v22 = vrot.slane %v974_v18, %v2248_v39 }
 0x872   :  { %v889_v23 = vadd.f32 %v887_v17, %v883_v21  ;;  %v1126_v17 = vrot.slane %v974_v18, %v2242_v36 }
 0x873   :  { %1689 = vmatpush3.bf16.msra.mxu0 %v1762_v61  ;;  %v1765_v61 = vld [vmem:[#allocation16 + $0x58] sm:$0xff]  }
 0x874   :  { %v891_v25 = vmax.f32 %v889_v23, 0.0  ;;  %1702 = vmatprep.subr.bf16.mxu0 %v2046_v0 }
 0x876   :  { %v892_v27 = vpack.c.bf16 %v891_v25, %v890_v24 }
 0x878   :  { %1667 = vmatmul.mubr.msk.bf16.vlgmr.msra.gmra.mxu1 %vm193_vm1, %v892_v27 }
 0x879   :  { %1679 = vmatpush3.bf16.msra.mxu1 %v1757_v26  ;;  %1682 = vmatprep.mubr.msk.bf16.mxu1 %vm2047_vm0, %v2046_v0 }
 0x87a   :  { %1680 = vmatprep.subr.bf16.mxu1 %v2046_v0 }
 0x87d   :  { %1681 = vmatpush3.bf16.msra.mxu1 %v1758_v28 }
 0x87e   :  { %1694 = vmatprep.subr.bf16.mxu1 %v2046_v0 }
 0x880   :  { %1683 = vmatmul.mubr.msk.bf16.vlgmr.msra.gmra.mxu1 %vm193_vm1, %v1036_v53 }
 0x881   :  { %1698 = vmatprep.mubr.msk.bf16.mxu1 %vm2047_vm0, %v2046_v0  ;;  %1695 = vmatpush3.bf16.msra.mxu1 %v1759_v29 }
 0x882   :  { %1696 = vmatprep.subr.bf16.mxu1 %v2046_v0 }
 0x885   :  { %1697 = vmatpush3.bf16.msra.mxu1 %v1760_v30  ;;  %v1763_v30 = vld [vmem:[#allocation16 + $0x48] sm:$0xff]  }
 0x886   :  { %1710 = vmatprep.subr.bf16.mxu1 %v2046_v0 }
 0x938   :  { %v942_v31 = vpop.f32.mrf.mxu1 }
 0x939   :  { %v949_v33 = vadd.f32 %v942_v31, %v2183_v3 }
 0x93a   :  { %v1668_v32 = vpop.f32.mrf.mxu1 }
 0x93b   :  { %v2322_v41 = vadd.f32 %v1528_v8, %v949_v33  ;;  %v1764_v32 = vld [vmem:[#allocation16 + $0x40] sm:$0xff]   ;;  %v1540_v33 = vld [vmem:[%s2401_s11 + $0x2] ss:$0 sm:$0xff] }
 0x93c   :  { %v945_v9 = vpop.f32.mrf.mxu1 }
 0x93d   :  { %v950_v37 = vadd.f32 %v945_v9, %v2185_v4 }
 0x93e   :  { %v1669_v38 = vpop.f32.mrf.mxu1 }
 0x93f   :  { %v2324_v42 = vadd.f32 %v1528_v8, %v950_v37 }
 0x940   :  { %v1090_v43 = vpop.f32.mrf.mxu1 }
 0x941   :  { %v1222_v3 = vpack.c.bf16 %v2324_v42, %v2322_v41  ;;  %v1091_v44 = vadd.f32 %v1533_v40, %v1090_v43 }
 0x942   :  { %v1684_v45 = vpop.f32.mrf.mxu1 }
 0x943   :  { %1699 = vmatmul.mubr.msk.bf16.vlgmr.msra.gmra.mxu1 %vm193_vm1, %v1222_v3  ;;  %v1097_v46 = vsel %vm193_vm1, %v1091_v44, 0.0 }
 0x944   :  { %1098 = vadd.xlane.f32.xlu0 %v1097_v46  ;;  %v1093_v4 = vpop.f32.mrf.mxu1  ;;  %1714 = vmatprep.mubr.msk.bf16.mxu1 %vm2047_vm0, %v2046_v0 }
 0x945   :  { %v1094_v47 = vadd.f32 %v1533_v40, %v1093_v4  ;;  %1711 = vmatpush3.bf16.msra.mxu1 %v1765_v61 }
 0x946   :  { %v1685_v48 = vpop.f32.mrf.mxu1  ;;  %1712 = vmatprep.subr.bf16.mxu1 %v2046_v0 }
 0x947   :  { %v1100_v49 = vsel %vm193_vm1, %v1094_v47, 0.0 }
 0x948   :  { %1101 = vadd.xlane.f32.xlu1 %v1100_v49 }
 0x9cd   :  { %v1099_v50 = vpop.xlane.xlu0 %1098 }
 0x9ce   :  { %v1103_v51 = vmul.f32 0.03125, %v1099_v50 }
 0x9d0   :  { %v1105_v52 = vsub.f32 %v1091_v44, %v1103_v51  ;;  %v1546_v44 = vld [vmem:[%s2401_s11 + $0x4] ss:$0 sm:$0xff] }
 0x9d1   :  { %v1102_v53 = vpop.xlane.xlu1 %1101 }
 0x9d2   :  { %v1104_v54 = vmul.f32 0.03125, %v1102_v53  ;;  %v1107_v55 = vmul.f32 %v1105_v52, %v1105_v52 }
 0x9d4   :  { %v1106_v56 = vsub.f32 %v1094_v47, %v1104_v54  ;;  %v1109_v57 = vsel %vm193_vm1, %v1107_v55, 0.0 }
 0x9d5   :  { %1110 = vadd.xlane.f32.xlu0 %v1109_v57 }
 0x9d6   :  { %v1108_v58 = vmul.f32 %v1106_v56, %v1106_v56 }
 0x9d8   :  { %v1112_v59 = vsel %vm193_vm1, %v1108_v58, 0.0 }
 0x9d9   :  { %1113 = vadd.xlane.f32.xlu1 %v1112_v59 }
 0xa03   :  { %v1276_v62 = vpop.f32.mrf.mxu1 }
 0xa04   :  { %v1277_v5 = vadd.f32 %v1542_v63, %v1276_v62  ;;  %v1766_v62 = vld [vmem:[#allocation16 + $0x50] sm:$0xff]  }
 0xa05   :  { %v1700_v1 = vpop.f32.mrf.mxu1  ;;  %1713 = vmatpush3.bf16.msra.mxu1 %v1766_v62 }
 0xa07   :  { %v1279_v2 = vpop.f32.mrf.mxu1 }
 0xa08   :  { %v1280_v6 = vadd.f32 %v1542_v63, %v1279_v2 }
 0xa09   :  { %v1701_v7 = vpop.f32.mrf.mxu1 }
 0xa0a   :  { %v1283_v10 = vpack.c.bf16 %v1280_v6, %v1277_v5 }
 0xa5e   :  { %v1111_v11 = vpop.xlane.xlu0 %1110 }
 0xa5f   :  { %v1115_v12 = vmul.f32 0.03125, %v1111_v11 }
 0xa61   :  { %v1117_v16 = vadd.f32 1e-05, %v1115_v12 }
 0xa62   :  { %v1114_v13 = vpop.xlane.xlu1 %1113 }
 0xa63   :  { %1791 = vrsqrt.f32 %v1117_v16  ;;  %v1116_v14 = vmul.f32 0.03125, %v1114_v13 }
 0xa65   :  { %v1118_v15 = vadd.f32 1e-05, %v1116_v14 }
 0xa67   :  { %1793 = vrsqrt.f32 %v1118_v15 }
 0xa70   :  { %v1792_v19 = vpop.eup %1791 }
 0xa71   :  { %v1121_v20 = vmul.f32 %v1792_v19, %v1105_v52 }
 0xa73   :  { %v1127_v21 = vmul.f32 %v1126_v17, %v1121_v20 }
 0xa74   :  { %v1794_v23 = vpop.eup %1793 }
 0xa75   :  { %v1122_v24 = vmul.f32 %v1794_v23, %v1106_v56  ;;  %v1133_v26 = vadd.f32 %v1132_v22, %v1127_v21 }
 0xa77   :  { %v1128_v25 = vmul.f32 %v1126_v17, %v1122_v24  ;;  %v1135_v28 = vmax.f32 %v1133_v26, 0.0 }
 0xa79   :  { %v1134_v27 = vadd.f32 %v1132_v22, %v1128_v25 }
 0xa7b   :  { %v1136_v29 = vmax.f32 %v1134_v27, 0.0 }
 0xa7d   :  { %v1137_v31 = vpack.c.bf16 %v1136_v29, %v1135_v28 }
 0xa7f   :  { %1691 = vmatmul.mubr.msk.bf16.vlgmr.msra.gmra.mxu0 %vm193_vm1, %v1137_v31 }
 0xa80   :  { %1703 = vmatpush3.bf16.msra.mxu0 %v1763_v30  ;;  %1706 = vmatprep.mubr.msk.bf16.mxu0 %vm2047_vm0, %v2046_v0 }
 0xa81   :  { %1704 = vmatprep.subr.bf16.mxu0 %v2046_v0 }
 0xa84   :  { %1705 = vmatpush3.bf16.msra.mxu0 %v1764_v32 }
 0xa87   :  { %1707 = vmatmul.mubr.msk.bf16.vlgmr.msra.gmra.mxu0 %vm193_vm1, %v1283_v10  ;;  %v1541_v10 = vld [vmem:[%s2402_s12 + $0x2] sm:$0x3]  ;;  %s1979_s12 = scalar_lea.vmem %s1459_s7, 256 }
 0xa88   :  { %v1373_v11 = vrot.slane %v1541_v10, %v2242_v36  ;;  %v1379_v0 = vrot.slane %v1541_v10, %v2248_v39  ;;  %p1980_p3 = scmp.ne.s32.totalorder %s1459_s7, %s1979_s12  ;;  %p1985_p5 = scmp.lt.s32.totalorder %s1979_s12, %s1979_s12 }
 0xa8a   :  { %p1986_p6 = por %p1985_p5, %p1984_p4 }
 0xa8c   :  { %p1987_p7 = pnand %p1986_p6, %p1980_p3 }
 0xb3f   :  { %v1187_v8 = vpop.f32.mrf.mxu0 }
 0xb40   :  { %v1194_v9 = vadd.f32 %v1187_v8, %v2279_v35 }
 0xb41   :  { %v1692_v37 = vpop.f32.mrf.mxu0 }
 0xb42   :  { %v1200_v38 = vadd.f32 %v1540_v33, %v1194_v9 }
 0xb43   :  { %v1190_v40 = vpop.f32.mrf.mxu0 }
 0xb44   :  { %1449 = vst.msk [vmem:[#allocation17] sm:$0xff] %vm193_vm1, %v1200_v38  ;;  %v1195_v43 = vadd.f32 %v1190_v40, %v2276_v34 }
 0xb45   :  { %v1693_v3 = vpop.f32.mrf.mxu0 }
 0xb46   :  { %v1201_v45 = vadd.f32 %v1540_v33, %v1195_v43 }
 0xb47   :  { %v1337_v46 = vpop.f32.mrf.mxu0 }
 0xb48   :  { %1450 = vst.msk [vmem:[#allocation17 + $0x8] sm:$0xff] %vm193_vm1, %v1201_v45  ;;  %v1338_v4 = vadd.f32 %v1546_v44, %v1337_v46 }
 0xb49   :  { %v1708_v47 = vpop.f32.mrf.mxu0 }
 0xb4a   :  { %v1344_v35 = vsel %vm193_vm1, %v1338_v4, 0.0 }
 0xb4b   :  { %1345 = vadd.xlane.f32.xlu0 %v1344_v35  ;;  %v1340_v48 = vpop.f32.mrf.mxu0 }
 0xb4c   :  { %v1341_v49 = vadd.f32 %v1546_v44, %v1340_v48 }
 0xb4d   :  { %v1709_v50 = vpop.f32.mrf.mxu0 }
 0xb4e   :  { %v1347_v51 = vsel %vm193_vm1, %v1341_v49, 0.0 }
 0xb4f   :  { %1348 = vadd.xlane.f32.xlu1 %v1347_v51 }
 0xbd4   :  { %v1346_v34 = vpop.xlane.xlu0 %1345 }
 0xbd5   :  { %v1350_v52 = vmul.f32 0.03125, %v1346_v34 }
 0xbd7   :  { %v1352_v53 = vsub.f32 %v1338_v4, %v1350_v52 }
 0xbd8   :  { %v1349_v54 = vpop.xlane.xlu1 %1348 }
 0xbd9   :  { %v1351_v55 = vmul.f32 0.03125, %v1349_v54  ;;  %v1354_v56 = vmul.f32 %v1352_v53, %v1352_v53 }
 0xbdb   :  { %v1353_v57 = vsub.f32 %v1341_v49, %v1351_v55  ;;  %v1356_v58 = vsel %vm193_vm1, %v1354_v56, 0.0 }
 0xbdc   :  { %1357 = vadd.xlane.f32.xlu0 %v1356_v58 }
 0xbdd   :  { %v1355_v59 = vmul.f32 %v1353_v57, %v1353_v57 }
 0xbdf   :  { %v1359_v60 = vsel %vm193_vm1, %v1355_v59, 0.0 }
 0xbe0   :  { %1360 = vadd.xlane.f32.xlu1 %v1359_v60 }
 0xc65   :  { %v1358_v63 = vpop.xlane.xlu0 %1357 }
 0xc66   :  { %v1362_v1 = vmul.f32 0.03125, %v1358_v63 }
 0xc68   :  { %v1364_v2 = vadd.f32 1e-05, %v1362_v1 }
 0xc69   :  { %v1361_v5 = vpop.xlane.xlu1 %1360 }
 0xc6a   :  { %1795 = vrsqrt.f32 %v1364_v2  ;;  %v1363_v6 = vmul.f32 0.03125, %v1361_v5 }
 0xc6c   :  { %v1365_v7 = vadd.f32 1e-05, %v1363_v6 }
 0xc6e   :  { %1797 = vrsqrt.f32 %v1365_v7 }
 0xc77   :  { %v1796_v12 = vpop.eup %1795 }
 0xc78   :  { %v1368_v16 = vmul.f32 %v1796_v12, %v1352_v53 }
 0xc7a   :  { %v1374_v13 = vmul.f32 %v1373_v11, %v1368_v16 }
 0xc7b   :  { %v1798_v14 = vpop.eup %1797 }
 0xc7c   :  { %v1369_v15 = vmul.f32 %v1798_v14, %v1353_v57  ;;  %v1380_v17 = vadd.f32 %v1379_v0, %v1374_v13 }
 0xc7e   :  { %v1375_v18 = vmul.f32 %v1373_v11, %v1369_v15  ;;  %v1382_v20 = vmax.f32 %v1380_v17, 0.0 }
 0xc80   :  { %v1381_v19 = vadd.f32 %v1379_v0, %v1375_v18 }
 0xc82   :  { %v1383_v21 = vmax.f32 %v1381_v19, 0.0 }
 0xc84   :  { %v1384_v22 = vpack.c.bf16 %v1383_v21, %v1382_v20 }
 0xc86   :  { %1715 = vmatmul.mubr.msk.bf16.vlgmr.msra.gmra.mxu1 %vm193_vm1, %v1384_v22 }
 0xc87   :  { %1990 = shalt.err (!%p1987_p7)
}
 0xc88   :  { %1464 = dma.vmem_to_hbm [thread:$0]  %s1459_s7, 256, %s2403_s13, [#allocation4], %s2034_s16, %s2034_s16, %s2035_s17  }
 0xc89   :  { %v1553_v36 = vld [vmem:[%s2401_s11 + $0x5] ss:$0 sm:$0xff]  ;;  %s2053_s18 = smov [#allocation18]  }
 0xc8a   :  { %s1470_s19 = sshll.u32 %s2053_s18, 4  ;;  %s1471_s19 = int_to_ptr.vmem [resolvable:$true] %s1470_s19 }
 0xc8b   :  { %s1999_s13 = scalar_lea.vmem %s1471_s19, 256  ;;  %p2004_p9 = scmp.lt.s32.totalorder %s1471_s19, %s1471_s19 }
 0xc8c   :  { %p2000_p8 = scmp.ne.s32.totalorder %s1471_s19, %s1999_s13  ;;  %p2005_p10 = scmp.lt.s32.totalorder %s1999_s13, %s1999_s13 }
 0xc8e   :  { %p2006_p11 = por %p2005_p10, %p2004_p9 }
 0xc90   :  { %p2007_p12 = pnand %p2006_p11, %p2000_p8 }
 0xd46   :  { %v1434_v39 = vpop.f32.mrf.mxu1 }
 0xd47   :  { %v1441_v23 = vadd.f32 %v1434_v39, %v2322_v41 }
 0xd48   :  { %v1716_v24 = vpop.f32.mrf.mxu1 }
 0xd49   :  { %v1447_v25 = vadd.f32 %v1553_v36, %v1441_v23 }
 0xd4a   :  { %v1437_v26 = vpop.f32.mrf.mxu1 }
 0xd4b   :  { %1451 = vst.msk [vmem:[#allocation18] sm:$0xff] %vm193_vm1, %v1447_v25  ;;  %v1442_v27 = vadd.f32 %v1437_v26, %v2324_v42 }
 0xd4c   :  { %v1717_v28 = vpop.f32.mrf.mxu1 }
 0xd4d   :  { %v1448_v29 = vadd.f32 %v1553_v36, %v1442_v27 }
 0xd4f   :  { %1452 = vst.msk [vmem:[#allocation18 + $0x8] sm:$0xff] %vm193_vm1, %v1448_v29 }
 0xd50   :  { %2010 = shalt.err (!%p2007_p12)
}
 0xd51   :  { %1476 = dma.vmem_to_hbm [thread:$0]  %s1471_s19, 256, %s2404_s14, [#allocation19], %s2034_s16, %s2034_s16, %s2035_s17  }
 0xd52   :  { %2029 = dma.done.wait [#allocation4], 256  }
 0xd53   :  { %2030 = vsyncadd [#allocation4], 4294967040 }
 0xd54   :  { %2031 = dma.done.wait [#allocation19], 256  }
 0xd55   :  { %2032 = vsyncadd [#allocation19], 4294967040 }
 0xd56   :  { %1483 = vsyncpa [#allocation3], 1 }
 0xd57   :  { %1484 = vsyncpa [#allocation6], 1 }
 0xd58   :  { %1485 = vsyncpa [#allocation9], 1 }
 0xd59   :  { %1486 = vsyncpa [#allocation12], 1 }
 0xd5a   :  { %1487 = vsyncpa [#allocation15], 1 }
 0xd5b   :  { %1488 = vsyncpa [#allocation4], 1 }
 0xd5c   :  { %1489 = vsyncpa [#allocation19], 1 }

</bundles_post_ra>
